<compile_context>
chip_gen: v7x
topology: tpu7x:2x2x1
jax: 0.10.0
libtpu: 0.0.40
codegen_flags: <defaults>
</compile_context>

<pallas_src>
import math
import functools

import jax
import jax.numpy as jnp
import numpy as np
from jax.experimental import pallas as pl
from jax.experimental.pallas import tpu as pltpu

_LANE = 128
_MiB = 1024 * 1024


def _round_up(x, m):
    return ((x + m - 1) // m) * m


def _erf(x):
    # Abramowitz & Stegun 7.1.26 rational approximation (|err| <= 1.5e-7),
    # built only from abs/mul/add/exp/where (all with guaranteed Mosaic
    # lowerings), so we never depend on a lax.erf lowering rule.
    p = 0.3275911
    a1, a2, a3, a4, a5 = (0.254829592, -0.284496736, 1.421413741,
                          -1.453152027, 1.061405429)
    ax = jnp.abs(x)
    t = 1.0 / (1.0 + p * ax)
    poly = ((((a5 * t + a4) * t + a3) * t + a2) * t + a1) * t
    y = 1.0 - poly * jnp.exp(-(ax * ax))
    return jnp.where(x < 0, -y, y)


def _gelu_exact(x):
    # nn.GELU() (erf form), accurate to ~1e-7 absolute.
    return 0.5 * x * (1.0 + _erf(x * (1.0 / math.sqrt(2.0))))


# --------------------------------------------------------------------------
# Fused kernel: one grid step = (one batch tile, one encoder layer).
# --------------------------------------------------------------------------
def _fused_encoder_kernel(bt, L, Dp, H, dkp, dvp, cdt, approx_recip,
                          src_ref, wq_ref, wk_ref, wv_ref, wo_ref,
                          sc1_ref, sh1_ref, w1_ref, b1_ref, w2_ref, b2_ref,
                          sc2_ref, sh2_ref, out_ref, x_scr):
    f32 = jnp.float32
    layer = pl.program_id(1)
    R = bt * L          # rows in this batch tile
    X = bt * H          # batched attention "batch x heads" dim

    # Load src into the resident f32 activation scratch at layer 0 of this
    # batch tile; later layers reuse it straight from VMEM (no HBM round-trip).
    @pl.when(layer == 0)
    def _():
        x_scr[...] = src_ref[...].reshape(R, Dp).astype(f32)

    x = x_scr[...]                                   # (R, Dp) f32 residual
    xc = x.astype(cdt)

    # ---- multi-head self-attention -----------------------------------------
    # Fused QKV projections (1/sqrt(d_k) is pre-folded into W_Q).
    q = jnp.dot(xc, wq_ref[...], preferred_element_type=f32)   # (R, H*dkp)
    k = jnp.dot(xc, wk_ref[...], preferred_element_type=f32)   # (R, H*dkp)
    v = jnp.dot(xc, wv_ref[...], preferred_element_type=f32)   # (R, H*dvp)

    def to_xld(t, d):
        # (R, H*d) -> (bt*H, L, d) with x = h*bt + b.  ONE relayout per tensor,
        # independent of bt (no per-batch-element unroll / concatenate).
        t = t.reshape(R, H, d)
        t = pltpu.einshape("rhd->hrd", t)            # (H, R, d)
        return t.reshape(X, L, d).astype(cdt)

    qh = to_xld(q, dkp)
    kh = to_xld(k, dkp)
    vh = to_xld(v, dvp)

    # Single (bt*H)-batched score / softmax / context (doc-validated
    # 'bqd,bkd->bqk' pattern).
    s = jnp.einsum("xld,xmd->xlm", qh, kh,
                   preferred_element_type=f32)       # (X, L, L)
    s = s - jnp.max(s, axis=-1, keepdims=True)
    p = jnp.exp(s)
    den = jnp.sum(p, axis=-1, keepdims=True)
    if approx_recip:
        attn = p * pl.reciprocal(den, approx=True)   # EUP slot, frees VALU
    else:
        attn = p / den                               # exact (f32 path)

    ctx = jnp.einsum("xlm,xmd->xld", attn.astype(cdt), vh,
                     preferred_element_type=f32)     # (X, L, dvp)
    ctx = pltpu.einshape("hrd->rhd", ctx.reshape(H, R, dvp))
    ctx = ctx.reshape(R, H * dvp)

    # Single fused output projection over all heads.
    attn_out = jnp.dot(ctx.astype(cdt), wo_ref[...],
                       preferred_element_type=f32)   # (R, Dp)

    # ---- residual + folded BatchNorm (attn) ---------------------------------
    x = x + attn_out
    x = x * sc1_ref[...] + sh1_ref[...]

    # ---- position-wise feed-forward -----------------------------------------
    h1 = jnp.dot(x.astype(cdt), w1_ref[...],
                 preferred_element_type=f32) + b1_ref[...]
    h1 = _gelu_exact(h1)                             # exact-erf GELU (~1e-7)
    ff = jnp.dot(h1.astype(cdt), w2_ref[...],
                 preferred_element_type=f32) + b2_ref[...]

    # ---- residual + folded BatchNorm (ffn) ----------------------------------
    x = x + ff
    x = x * sc2_ref[...] + sh2_ref[...]
    x_scr[...] = x

    @pl.when(layer == pl.num_programs(1) - 1)
    def _():
        out_ref[...] = x.reshape(bt, L, Dp).astype(out_ref.dtype)


# --------------------------------------------------------------------------
# Weight prep: lane-alignment padding, scale fold, compute-dtype cast.
# --------------------------------------------------------------------------
def _prep_params(params, cdt):
    """Zero-pad to lane-aligned shapes, fold 1/sqrt(d_k) into W_Q and cast the
    matmul weights to the compute dtype.  Pad channels of the activation stay
    exactly zero through residual + folded-BN (pad scales/shifts/biases are 0),
    so slicing the output back is exact."""
    H, dk, dv = params['n_heads'], params['d_k'], params['d_v']
    wq = params['wq']
    Lyr, D, _ = wq.shape
    dff = params['w1'].shape[-1]

    Dp = _round_up(D, _LANE)
    dffp = _round_up(dff, _LANE)
    if _LANE % H == 0:                       # make H*dkp / H*dvp 128-multiples
        dkp = _round_up(dk, _LANE // H)
        dvp = _round_up(dv, _LANE // H)
    else:                                    # fall back to sublane alignment
        dkp = _round_up(dk, 8)
        dvp = _round_up(dv, 8)

    def pad_qkv(w, d, d_p):
        w = w.reshape(Lyr, D, H, d)
        w = jnp.pad(w, ((0, 0), (0, Dp - D), (0, 0), (0, d_p - d)))
        return w.reshape(Lyr, Dp, H * d_p)

    wq_p = pad_qkv(wq * (1.0 / math.sqrt(dk)), dk, dkp)   # scale fold
    wk_p = pad_qkv(params['wk'], dk, dkp)
    wv_p = pad_qkv(params['wv'], dv, dvp)

    wo = params['wo'].reshape(Lyr, H, dv, D)
    wo = jnp.pad(wo, ((0, 0), (0, 0), (0, dvp - dv), (0, Dp - D)))
    wo_p = wo.reshape(Lyr, H * dvp, Dp)

    w1_p = jnp.pad(params['w1'], ((0, 0), (0, Dp - D), (0, dffp - dff)))
    b1_p = jnp.pad(params['b1'], ((0, 0), (0, 0), (0, dffp - dff)))
    w2_p = jnp.pad(params['w2'], ((0, 0), (0, dffp - dff), (0, Dp - D)))
    b2_p = jnp.pad(params['b2'], ((0, 0), (0, 0), (0, Dp - D)))

    pad_d = lambda a: jnp.pad(a, ((0, 0), (0, 0), (0, Dp - D)))

    prepped = dict(
        wq=wq_p.astype(cdt), wk=wk_p.astype(cdt), wv=wv_p.astype(cdt),
        wo=wo_p.astype(cdt), w1=w1_p.astype(cdt), w2=w2_p.astype(cdt),
        b1=b1_p.astype(jnp.float32), b2=b2_p.astype(jnp.float32),
        sc1=pad_d(params['sc1']).astype(jnp.float32),
        sh1=pad_d(params['sh1']).astype(jnp.float32),
        sc2=pad_d(params['sc2']).astype(jnp.float32),
        sh2=pad_d(params['sh2']).astype(jnp.float32),
    )
    dims = dict(Dp=Dp, dkp=dkp, dvp=dvp, dffp=dffp, H=H, n_layers=Lyr)
    return prepped, dims


# --------------------------------------------------------------------------
# Generation-aware VMEM budgeting & batch-tile selection.
# --------------------------------------------------------------------------
def _vmem_estimate(bt, L, Dp, H, dkp, dvp, dffp, cbytes):
    """Rough per-core VMEM working set (bytes) for one grid step."""
    f = 4
    R = bt * L
    Hdk, Hdv = H * dkp, H * dvp
    w = (2 * Dp * Hdk + Dp * Hdv + Hdv * Dp + Dp * dffp + dffp * Dp) * cbytes
    w += (4 * Dp + dffp + Dp) * f
    w *= 2                                       # pipeline double buffering
    io = 2 * 2 * bt * L * Dp * f                 # src + out blocks, 2 buffers
    scratch = R * Dp * f                         # resident activation
    inter = (R * (2 * Hdk + Hdv) * (f + cbytes)        # q/k/v (f32 + cdt)
             + bt * H * L * L * (2 * f + cbytes)       # scores + probs + cast
             + R * Hdv * (f + cbytes)                  # context
             + R * Dp * f                              # attn_out
             + R * dffp * (f + cbytes)                 # h1
             + R * Dp * f)                             # ff
    return int(w + io + scratch + inter)


def _vmem_capacity_bytes():
    try:
        info = pltpu.get_tpu_info()
        cap = int(getattr(info, 'vmem_capacity_bytes', 0) or 0)
        if cap > 0:
            return cap
    except Exception:
        pass
    return 64 * _MiB          # conservative default (v7x per-TensorCore)


def _pick_batch_tile(B, L, est_fn, budget, target_rows):
    divs = [d for d in range(1, B + 1) if B % d == 0]
    feasible = [d for d in divs
                if d * L <= target_rows and est_fn(d) <= budget]
    if not feasible:
        return 1
    best = max(feasible)
    if B // best == 1:
        # v7x has 2 TensorCores: give the 'parallel' batch axis >= 2 steps if
        # that costs no more than halving the tile.
        alt = [d for d in feasible if (B // d) >= 2 and 2 * d >= best]
        if alt:
            best = max(alt)
    return best


# --------------------------------------------------------------------------
# Wrapper: one pallas_call for the full encoder stack.
# --------------------------------------------------------------------------
def tst_encoder(src, params, *, compute_dtype=jnp.bfloat16, batch_tile=None,
                approx_softmax_recip=None, interpret=False):
    B, L, D = src.shape
    cdt = compute_dtype
    cbytes = jnp.dtype(cdt).itemsize
    if approx_softmax_recip is None:
        approx_softmax_recip = (cdt != jnp.float32)

    prepped, dims = _prep_params(params, cdt)
    Dp, dkp, dvp, dffp, H = (dims['Dp'], dims['dkp'], dims['dvp'],
                             dims['dffp'], dims['H'])
    n_layers = dims['n_layers']
    Hdk, Hdv = H * dkp, H * dvp

    # v5e/v6e (128 MiB VMEM): large tiles to clear the weight-streaming
    # roofline; v7x (64 MiB): budget-checked smaller tiles.
    cap = _vmem_capacity_bytes()
    budget = int(cap * 0.70)
    target_rows = 1024 if cap >= 96 * _MiB else 512

    def est(bt_):
        return _vmem_estimate(bt_, L, Dp, H, dkp, dvp, dffp, cbytes)

    if batch_tile is None:
        bt = _pick_batch_tile(B, L, est, budget, target_rows)
    else:
        bt = batch_tile
    assert B % bt == 0, "batch_tile must divide batch size"
    n_bt = B // bt

    vmem_limit = int(min(cap * 0.9, max(48 * _MiB, int(est(bt) * 1.5))))

    src_p = src.astype(jnp.float32)
    if Dp != D:
        src_p = jnp.pad(src_p, ((0, 0), (0, 0), (0, Dp - D)))

    kern = functools.partial(_fused_encoder_kernel, bt, L, Dp, H, dkp, dvp,
                             cdt, approx_softmax_recip)

    def lspec(shape):
        # Per-layer weight block: leading (layer) axis squeezed, indexed by the
        # layer grid axis; constant over the batch-tile axis.
        nd = len(shape)
        return pl.BlockSpec((None,) + shape,
                            lambda b, l, _nd=nd: (l,) + (0,) * _nd)

    in_specs = [
        pl.BlockSpec((bt, L, Dp), lambda b, l: (b, 0, 0)),   # src (batch tile)
        lspec((Dp, Hdk)),                                    # W_Q^T (scaled)
        lspec((Dp, Hdk)),                                    # W_K^T
        lspec((Dp, Hdv)),                                    # W_V^T
        lspec((Hdv, Dp)),                                    # W_O^T
        lspec((1, Dp)), lspec((1, Dp)),                      # BN-attn scale/shift
        lspec((Dp, dffp)), lspec((1, dffp)),                 # FF linear 1 (W, b)
        lspec((dffp, Dp)), lspec((1, Dp)),                   # FF linear 2 (W, b)
        lspec((1, Dp)), lspec((1, Dp)),                      # BN-ffn scale/shift
    ]
    out_specs = pl.BlockSpec((bt, L, Dp), lambda b, l: (b, 0, 0))

    out = pl.pallas_call(
        kern,
        out_shape=jax.ShapeDtypeStruct((B, L, Dp), jnp.float32),
        grid=(n_bt, n_layers),
        in_specs=in_specs,
        out_specs=out_specs,
        scratch_shapes=[pltpu.VMEM((bt * L, Dp), jnp.float32)],
        compiler_params=pltpu.CompilerParams(
            dimension_semantics=("parallel", "arbitrary"),
            vmem_limit_bytes=vmem_limit),
        interpret=interpret,
    )(src_p, prepped['wq'], prepped['wk'], prepped['wv'], prepped['wo'],
      prepped['sc1'], prepped['sh1'], prepped['w1'], prepped['b1'],
      prepped['w2'], prepped['b2'], prepped['sc2'], prepped['sh2'])

    return out[..., :D] if Dp != D else out


# --------------------------------------------------------------------------
# Deterministic synthetic parameters (stacked over layers, eval-mode BN folded).
# --------------------------------------------------------------------------
def init_params(key, n_layers, d_model, n_heads, d_k, d_v, d_ff):
    ks = jax.random.split(key, 16)
    scale = 0.1
    eps = 1e-5
    Lyr = n_layers

    def rnd(k, shape):
        return jax.random.normal(k, shape, jnp.float32) * scale

    def bn_fold(kg, kb, km, kv):
        gamma = 1.0 + rnd(kg, (Lyr, 1, d_model))
        beta = rnd(kb, (Lyr, 1, d_model))
        mean = rnd(km, (Lyr, 1, d_model))
        var = 1.0 + jnp.abs(rnd(kv, (Lyr, 1, d_model)))
        sc = gamma / jnp.sqrt(var + eps)
        sh = beta - mean * sc
        return sc, sh

    sc1, sh1 = bn_fold(ks[8], ks[9], ks[10], ks[11])
    sc2, sh2 = bn_fold(ks[12], ks[13], ks[14], ks[15])

    return dict(
        n_heads=n_heads, d_k=d_k, d_v=d_v,
        wq=rnd(ks[0], (Lyr, d_model, n_heads * d_k)),
        wk=rnd(ks[1], (Lyr, d_model, n_heads * d_k)),
        wv=rnd(ks[2], (Lyr, d_model, n_heads * d_v)),
        wo=rnd(ks[3], (Lyr, n_heads * d_v, d_model)),
        w1=rnd(ks[4], (Lyr, d_model, d_ff)),
        b1=rnd(ks[5], (Lyr, 1, d_ff)),
        w2=rnd(ks[6], (Lyr, d_ff, d_model)),
        b2=rnd(ks[7], (Lyr, 1, d_model)),
        sc1=sc1, sh1=sh1, sc2=sc2, sh2=sh2,
    )


# --------------------------------------------------------------------------
# Pure-JAX reference (mirrors PyTorch eval-mode forward).
# --------------------------------------------------------------------------
def ref_encoder(src, p):
    B, L, D = src.shape
    H, dk, dv = p['n_heads'], p['d_k'], p['d_v']
    n_layers = p['wq'].shape[0]
    x = src
    for l in range(n_layers):
        q = (x @ p['wq'][l]).reshape(B, L, H, dk).transpose(0, 2, 1, 3)
        k = (x @ p['wk'][l]).reshape(B, L, H, dk).transpose(0, 2, 3, 1)
        v = (x @ p['wv'][l]).reshape(B, L, H, dv).transpose(0, 2, 1, 3)
        scores = (q @ k) / math.sqrt(dk)
        attn = jax.nn.softmax(scores, axis=-1)
        ctx = (attn @ v).transpose(0, 2, 1, 3).reshape(B, L, H * dv)
        x = x + ctx @ p['wo'][l]
        x = x * p['sc1'][l] + p['sh1'][l]
        h1 = jax.nn.gelu(x @ p['w1'][l] + p['b1'][l], approximate=False)
        x = x + (h1 @ p['w2'][l] + p['b2'][l])
        x = x * p['sc2'][l] + p['sh2'][l]
    return x


# --------------------------------------------------------------------------
if __name__ == "__main__":
    # Small shapes consistent with the module: src is (batch, q_len, d_model).
    B, L, D = 2, 8, 32
    n_heads = 4
    d_k = d_v = D // n_heads          # 8
    d_ff = 64
    n_layers = 2

    key = jax.random.PRNGKey(0)
    k_src, k_par = jax.random.split(key)
    src = jax.random.normal(k_src, (B, L, D), jnp.float32)
    params = init_params(k_par, n_layers, D, n_heads, d_k, d_v, d_ff)

    ref = ref_encoder(src, params)

    # 1) strict f32 compute path (matches the module's numerics); default tile
    #    picker gives bt=1 -> 2 steps along the parallel batch axis.
    out_f32 = jax.block_until_ready(
        tst_encoder(src, params, compute_dtype=jnp.float32))
    np.testing.assert_allclose(np.asarray(out_f32), np.asarray(ref),
                               rtol=2e-4, atol=2e-4)

    # 2) f32 path with 2 batch elements per grid step (exercises the bt>1
    #    batched-attention relayout path).
    out_bt = jax.block_until_ready(
        tst_encoder(src, params, compute_dtype=jnp.float32, batch_tile=2))
    np.testing.assert_allclose(np.asarray(out_bt), np.asarray(ref),
                               rtol=2e-4, atol=2e-4)

    # 3) bf16 fast path (MXU-native matmuls, f32 accumulation) — looser check.
    out_bf16 = jax.block_until_ready(
        tst_encoder(src, params, compute_dtype=jnp.bfloat16))
    np.testing.assert_allclose(np.asarray(out_bf16), np.asarray(ref),
                               rtol=5e-2, atol=5e-2)

    assert out_f32.shape == (B, L, D)
    print("KERNEL_OK")
</pallas_src>

<mosaic_0001>
module attributes {stable_mosaic.version = 11 : i64} {
  func.func @_fused_encoder_kernel(%arg0: i32, %arg1: i32, %arg2: memref<1x8x128xf32, #tpu.memory_space<vmem>>, %arg3: memref<1x128x128xf32, #tpu.memory_space<vmem>>, %arg4: memref<1x128x128xf32, #tpu.memory_space<vmem>>, %arg5: memref<1x128x128xf32, #tpu.memory_space<vmem>>, %arg6: memref<1x128x128xf32, #tpu.memory_space<vmem>>, %arg7: memref<1x1x128xf32, #tpu.memory_space<vmem>>, %arg8: memref<1x1x128xf32, #tpu.memory_space<vmem>>, %arg9: memref<1x128x128xf32, #tpu.memory_space<vmem>>, %arg10: memref<1x1x128xf32, #tpu.memory_space<vmem>>, %arg11: memref<1x128x128xf32, #tpu.memory_space<vmem>>, %arg12: memref<1x1x128xf32, #tpu.memory_space<vmem>>, %arg13: memref<1x1x128xf32, #tpu.memory_space<vmem>>, %arg14: memref<1x1x128xf32, #tpu.memory_space<vmem>>, %arg15: memref<1x8x128xf32, #tpu.memory_space<vmem>>, %arg16: memref<8x128xf32, #tpu.memory_space<vmem>>) attributes {dimension_semantics = [#tpu.dimension_semantics<parallel>, #tpu.dimension_semantics<arbitrary>], iteration_bounds = array<i64: 2, 2>, scalar_prefetch = 0 : i64, scratch_operands = 1 : i64, tpu.core_type = #tpu.core_type<tc>, window_params = [{transform_indices = @transform_0, window_bounds = array<i64: 1, 8, 128>}, {transform_indices = @transform_1, window_bounds = array<i64: 1, 128, 128>}, {transform_indices = @transform_2, window_bounds = array<i64: 1, 128, 128>}, {transform_indices = @transform_3, window_bounds = array<i64: 1, 128, 128>}, {transform_indices = @transform_4, window_bounds = array<i64: 1, 128, 128>}, {transform_indices = @transform_5, window_bounds = array<i64: 1, 1, 128>}, {transform_indices = @transform_6, window_bounds = array<i64: 1, 1, 128>}, {transform_indices = @transform_7, window_bounds = array<i64: 1, 128, 128>}, {transform_indices = @transform_8, window_bounds = array<i64: 1, 1, 128>}, {transform_indices = @transform_9, window_bounds = array<i64: 1, 128, 128>}, {transform_indices = @transform_10, window_bounds = array<i64: 1, 1, 128>}, {transform_indices = @transform_11, window_bounds = array<i64: 1, 1, 128>}, {transform_indices = @transform_12, window_bounds = array<i64: 1, 1, 128>}, {transform_indices = @transform_13, window_bounds = array<i64: 1, 8, 128>}]} {
    %c0_i32 = arith.constant 0 : i32
    %0 = arith.cmpi eq, %arg1, %c0_i32 : i32
    %1 = arith.extui %0 : i1 to i32
    %c0_i32_0 = arith.constant 0 : i32
    %2 = arith.cmpi ne, %1, %c0_i32_0 : i32
    scf.if %2 {
      %c0_65 = arith.constant 0 : index
      %c0_66 = arith.constant 0 : index
      %c0_67 = arith.constant 0 : index
      %111 = vector.load %arg2[%c0_65, %c0_66, %c0_67] : memref<1x8x128xf32, #tpu.memory_space<vmem>>, vector<1x8x128xf32>
      %112 = vector.shape_cast %111 : vector<1x8x128xf32> to vector<8x128xf32>
      %c0_68 = arith.constant 0 : index
      %c0_69 = arith.constant 0 : index
      %113 = vector.load %arg16[%c0_68, %c0_69] : memref<8x128xf32, #tpu.memory_space<vmem>>, vector<8x128xf32>
      tpu.vector_store %arg16[%c0_68, %c0_69], %112 {strides = array<i32>} : memref<8x128xf32, #tpu.memory_space<vmem>>, vector<8x128xf32>,
    } else {
    }
    %c0 = arith.constant 0 : index
    %c0_1 = arith.constant 0 : index
    %3 = vector.load %arg16[%c0, %c0_1] : memref<8x128xf32, #tpu.memory_space<vmem>>, vector<8x128xf32>
    %c0_2 = arith.constant 0 : index
    %c0_3 = arith.constant 0 : index
    %c0_4 = arith.constant 0 : index
    %4 = vector.load %arg3[%c0_2, %c0_3, %c0_4] : memref<1x128x128xf32, #tpu.memory_space<vmem>>, vector<1x128x128xf32>
    %5 = vector.shape_cast %4 : vector<1x128x128xf32> to vector<128x128xf32>
    %cst = arith.constant dense<0.000000e+00> : vector<8x128xf32>
    %6 = tpu.matmul %3, %5, %cst {dimension_numbers = #tpu.dot_dimension_numbers<[1], [0], [0], [1], [0, 0, 1, 1], [], []>} : vector<8x128xf32>, vector<128x128xf32>, vector<8x128xf32> -> vector<8x128xf32>
    %c0_5 = arith.constant 0 : index
    %c0_6 = arith.constant 0 : index
    %c0_7 = arith.constant 0 : index
    %7 = vector.load %arg4[%c0_5, %c0_6, %c0_7] : memref<1x128x128xf32, #tpu.memory_space<vmem>>, vector<1x128x128xf32>
    %8 = vector.shape_cast %7 : vector<1x128x128xf32> to vector<128x128xf32>
    %cst_8 = arith.constant dense<0.000000e+00> : vector<8x128xf32>
    %9 = tpu.matmul %3, %8, %cst_8 {dimension_numbers = #tpu.dot_dimension_numbers<[1], [0], [0], [1], [0, 0, 1, 1], [], []>} : vector<8x128xf32>, vector<128x128xf32>, vector<8x128xf32> -> vector<8x128xf32>
    %c0_9 = arith.constant 0 : index
    %c0_10 = arith.constant 0 : index
    %c0_11 = arith.constant 0 : index
    %10 = vector.load %arg5[%c0_9, %c0_10, %c0_11] : memref<1x128x128xf32, #tpu.memory_space<vmem>>, vector<1x128x128xf32>
    %11 = vector.shape_cast %10 : vector<1x128x128xf32> to vector<128x128xf32>
    %cst_12 = arith.constant dense<0.000000e+00> : vector<8x128xf32>
    %12 = tpu.matmul %3, %11, %cst_12 {dimension_numbers = #tpu.dot_dimension_numbers<[1], [0], [0], [1], [0, 0, 1, 1], [], []>} : vector<8x128xf32>, vector<128x128xf32>, vector<8x128xf32> -> vector<8x128xf32>
    %13 = vector.shape_cast %6 : vector<8x128xf32> to vector<8x4x32xf32>
    %14 = tpu.transpose %13, [1, 0, 2] : vector<8x4x32xf32> -> vector<4x8x32xf32>
    %15 = vector.shape_cast %9 : vector<8x128xf32> to vector<8x4x32xf32>
    %16 = tpu.transpose %15, [1, 0, 2] : vector<8x4x32xf32> -> vector<4x8x32xf32>
    %17 = vector.shape_cast %12 : vector<8x128xf32> to vector<8x4x32xf32>
    %18 = tpu.transpose %17, [1, 0, 2] : vector<8x4x32xf32> -> vector<4x8x32xf32>
    "tpu.trace_start"() <{level = 10 : i32, message = "xld,xmd->xlm"}> : () -> ()
    %cst_13 = arith.constant dense<0.000000e+00> : vector<4x8x8xf32>
    %19 = tpu.matmul %14, %16, %cst_13 {dimension_numbers = #tpu.dot_dimension_numbers<[2], [2], [1], [1], [0, 0, 0, 1, 1, 1], [0], [0]>} : vector<4x8x32xf32>, vector<4x8x32xf32>, vector<4x8x8xf32> -> vector<4x8x8xf32>
    "tpu.trace_stop"() : () -> ()
    %cst_14 = arith.constant dense<0xFF800000> : vector<4x8xf32>
    %20 = vector.multi_reduction <maximumf>, %19, %cst_14 [2] : vector<4x8x8xf32> to vector<4x8xf32>
    %21 = vector.shape_cast %20 : vector<4x8xf32> to vector<4x8x1xf32>
    %22 = vector.broadcast %21 : vector<4x8x1xf32> to vector<4x8x8xf32>
    %23 = arith.subf %19, %22 : vector<4x8x8xf32>
    %24 = math.exp %23 : vector<4x8x8xf32>
    %cst_15 = arith.constant dense<0.000000e+00> : vector<4x8xf32>
    %25 = vector.multi_reduction <add>, %24, %cst_15 [2] : vector<4x8x8xf32> to vector<4x8xf32>
    %26 = vector.shape_cast %25 : vector<4x8xf32> to vector<4x8x1xf32>
    %27 = vector.broadcast %26 : vector<4x8x1xf32> to vector<4x8x8xf32>
    %28 = arith.divf %24, %27 : vector<4x8x8xf32>
    "tpu.trace_start"() <{level = 10 : i32, message = "xlm,xmd->xld"}> : () -> ()
    %cst_16 = arith.constant dense<0.000000e+00> : vector<4x8x32xf32>
    %29 = tpu.matmul %28, %18, %cst_16 {dimension_numbers = #tpu.dot_dimension_numbers<[2], [1], [1], [2], [0, 0, 0, 1, 1, 2], [0], [0]>} : vector<4x8x8xf32>, vector<4x8x32xf32>, vector<4x8x32xf32> -> vector<4x8x32xf32>
    "tpu.trace_stop"() : () -> ()
    %30 = tpu.transpose %29, [1, 0, 2] : vector<4x8x32xf32> -> vector<8x4x32xf32>
    %31 = vector.shape_cast %30 : vector<8x4x32xf32> to vector<8x128xf32>
    %c0_17 = arith.constant 0 : index
    %c0_18 = arith.constant 0 : index
    %c0_19 = arith.constant 0 : index
    %32 = vector.load %arg6[%c0_17, %c0_18, %c0_19] : memref<1x128x128xf32, #tpu.memory_space<vmem>>, vector<1x128x128xf32>
    %33 = vector.shape_cast %32 : vector<1x128x128xf32> to vector<128x128xf32>
    %cst_20 = arith.constant dense<0.000000e+00> : vector<8x128xf32>
    %34 = tpu.matmul %31, %33, %cst_20 {dimension_numbers = #tpu.dot_dimension_numbers<[1], [0], [0], [1], [0, 0, 1, 1], [], []>} : vector<8x128xf32>, vector<128x128xf32>, vector<8x128xf32> -> vector<8x128xf32>
    %35 = arith.addf %3, %34 : vector<8x128xf32>
    %c0_21 = arith.constant 0 : index
    %c0_22 = arith.constant 0 : index
    %c0_23 = arith.constant 0 : index
    %36 = vector.load %arg7[%c0_21, %c0_22, %c0_23] : memref<1x1x128xf32, #tpu.memory_space<vmem>>, vector<1x1x128xf32>
    %37 = vector.shape_cast %36 : vector<1x1x128xf32> to vector<1x128xf32>
    %38 = vector.broadcast %37 : vector<1x128xf32> to vector<8x128xf32>
    %39 = arith.mulf %35, %38 : vector<8x128xf32>
    %c0_24 = arith.constant 0 : index
    %c0_25 = arith.constant 0 : index
    %c0_26 = arith.constant 0 : index
    %40 = vector.load %arg8[%c0_24, %c0_25, %c0_26] : memref<1x1x128xf32, #tpu.memory_space<vmem>>, vector<1x1x128xf32>
    %41 = vector.shape_cast %40 : vector<1x1x128xf32> to vector<1x128xf32>
    %42 = vector.broadcast %41 : vector<1x128xf32> to vector<8x128xf32>
    %43 = arith.addf %39, %42 : vector<8x128xf32>
    %c0_27 = arith.constant 0 : index
    %c0_28 = arith.constant 0 : index
    %c0_29 = arith.constant 0 : index
    %44 = vector.load %arg9[%c0_27, %c0_28, %c0_29] : memref<1x128x128xf32, #tpu.memory_space<vmem>>, vector<1x128x128xf32>
    %45 = vector.shape_cast %44 : vector<1x128x128xf32> to vector<128x128xf32>
    %cst_30 = arith.constant dense<0.000000e+00> : vector<8x128xf32>
    %46 = tpu.matmul %43, %45, %cst_30 {dimension_numbers = #tpu.dot_dimension_numbers<[1], [0], [0], [1], [0, 0, 1, 1], [], []>} : vector<8x128xf32>, vector<128x128xf32>, vector<8x128xf32> -> vector<8x128xf32>
    %c0_31 = arith.constant 0 : index
    %c0_32 = arith.constant 0 : index
    %c0_33 = arith.constant 0 : index
    %47 = vector.load %arg10[%c0_31, %c0_32, %c0_33] : memref<1x1x128xf32, #tpu.memory_space<vmem>>, vector<1x1x128xf32>
    %48 = vector.shape_cast %47 : vector<1x1x128xf32> to vector<1x128xf32>
    %49 = vector.broadcast %48 : vector<1x128xf32> to vector<8x128xf32>
    %50 = arith.addf %46, %49 : vector<8x128xf32>
    %cst_34 = arith.constant 5.000000e-01 : f32
    %51 = vector.broadcast %cst_34 : f32 to vector<8x128xf32>
    %52 = arith.mulf %51, %50 : vector<8x128xf32>
    %cst_35 = arith.constant 0.707106769 : f32
    %53 = vector.broadcast %cst_35 : f32 to vector<8x128xf32>
    %54 = arith.mulf %50, %53 : vector<8x128xf32>
    %55 = math.absf %54 : vector<8x128xf32>
    %cst_36 = arith.constant 0.327591091 : f32
    %56 = vector.broadcast %cst_36 : f32 to vector<8x128xf32>
    %57 = arith.mulf %56, %55 : vector<8x128xf32>
    %cst_37 = arith.constant 1.000000e+00 : f32
    %58 = vector.broadcast %cst_37 : f32 to vector<8x128xf32>
    %59 = arith.addf %58, %57 : vector<8x128xf32>
    %cst_38 = arith.constant 1.000000e+00 : f32
    %60 = vector.broadcast %cst_38 : f32 to vector<8x128xf32>
    %61 = arith.divf %60, %59 : vector<8x128xf32>
    %cst_39 = arith.constant 1.06140542 : f32
    %62 = vector.broadcast %cst_39 : f32 to vector<8x128xf32>
    %63 = arith.mulf %62, %61 : vector<8x128xf32>
    %cst_40 = arith.constant -1.45315206 : f32
    %64 = vector.broadcast %cst_40 : f32 to vector<8x128xf32>
    %65 = arith.addf %63, %64 : vector<8x128xf32>
    %66 = arith.mulf %65, %61 : vector<8x128xf32>
    %cst_41 = arith.constant 1.42141378 : f32
    %67 = vector.broadcast %cst_41 : f32 to vector<8x128xf32>
    %68 = arith.addf %66, %67 : vector<8x128xf32>
    %69 = arith.mulf %68, %61 : vector<8x128xf32>
    %cst_42 = arith.constant -0.284496725 : f32
    %70 = vector.broadcast %cst_42 : f32 to vector<8x128xf32>
    %71 = arith.addf %69, %70 : vector<8x128xf32>
    %72 = arith.mulf %71, %61 : vector<8x128xf32>
    %cst_43 = arith.constant 0.254829586 : f32
    %73 = vector.broadcast %cst_43 : f32 to vector<8x128xf32>
    %74 = arith.addf %72, %73 : vector<8x128xf32>
    %75 = arith.mulf %74, %61 : vector<8x128xf32>
    %76 = arith.mulf %55, %55 : vector<8x128xf32>
    %cst_44 = arith.constant 0.000000e+00 : f32
    %77 = vector.broadcast %cst_44 : f32 to vector<8x128xf32>
    %78 = arith.subf %77, %76 : vector<8x128xf32>
    %79 = math.exp %78 : vector<8x128xf32>
    %80 = arith.mulf %75, %79 : vector<8x128xf32>
    %cst_45 = arith.constant 1.000000e+00 : f32
    %81 = vector.broadcast %cst_45 : f32 to vector<8x128xf32>
    %82 = arith.subf %81, %80 : vector<8x128xf32>
    %cst_46 = arith.constant 0.000000e+00 : f32
    %83 = vector.broadcast %cst_46 : f32 to vector<8x128xf32>
    %84 = arith.cmpf olt, %54, %83 : vector<8x128xf32>
    %cst_47 = arith.constant 0.000000e+00 : f32
    %85 = vector.broadcast %cst_47 : f32 to vector<8x128xf32>
    %86 = arith.subf %85, %82 : vector<8x128xf32>
    %87 = arith.select %84, %86, %82 : vector<8x128xi1>, vector<8x128xf32>
    %cst_48 = arith.constant 1.000000e+00 : f32
    %88 = vector.broadcast %cst_48 : f32 to vector<8x128xf32>
    %89 = arith.addf %88, %87 : vector<8x128xf32>
    %90 = arith.mulf %52, %89 : vector<8x128xf32>
    %c0_49 = arith.constant 0 : index
    %c0_50 = arith.constant 0 : index
    %c0_51 = arith.constant 0 : index
    %91 = vector.load %arg11[%c0_49, %c0_50, %c0_51] : memref<1x128x128xf32, #tpu.memory_space<vmem>>, vector<1x128x128xf32>
    %92 = vector.shape_cast %91 : vector<1x128x128xf32> to vector<128x128xf32>
    %cst_52 = arith.constant dense<0.000000e+00> : vector<8x128xf32>
    %93 = tpu.matmul %90, %92, %cst_52 {dimension_numbers = #tpu.dot_dimension_numbers<[1], [0], [0], [1], [0, 0, 1, 1], [], []>} : vector<8x128xf32>, vector<128x128xf32>, vector<8x128xf32> -> vector<8x128xf32>
    %c0_53 = arith.constant 0 : index
    %c0_54 = arith.constant 0 : index
    %c0_55 = arith.constant 0 : index
    %94 = vector.load %arg12[%c0_53, %c0_54, %c0_55] : memref<1x1x128xf32, #tpu.memory_space<vmem>>, vector<1x1x128xf32>
    %95 = vector.shape_cast %94 : vector<1x1x128xf32> to vector<1x128xf32>
    %96 = vector.broadcast %95 : vector<1x128xf32> to vector<8x128xf32>
    %97 = arith.addf %93, %96 : vector<8x128xf32>
    %98 = arith.addf %43, %97 : vector<8x128xf32>
    %c0_56 = arith.constant 0 : index
    %c0_57 = arith.constant 0 : index
    %c0_58 = arith.constant 0 : index
    %99 = vector.load %arg13[%c0_56, %c0_57, %c0_58] : memref<1x1x128xf32, #tpu.memory_space<vmem>>, vector<1x1x128xf32>
    %100 = vector.shape_cast %99 : vector<1x1x128xf32> to vector<1x128xf32>
    %101 = vector.broadcast %100 : vector<1x128xf32> to vector<8x128xf32>
    %102 = arith.mulf %98, %101 : vector<8x128xf32>
    %c0_59 = arith.constant 0 : index
    %c0_60 = arith.constant 0 : index
    %c0_61 = arith.constant 0 : index
    %103 = vector.load %arg14[%c0_59, %c0_60, %c0_61] : memref<1x1x128xf32, #tpu.memory_space<vmem>>, vector<1x1x128xf32>
    %104 = vector.shape_cast %103 : vector<1x1x128xf32> to vector<1x128xf32>
    %105 = vector.broadcast %104 : vector<1x128xf32> to vector<8x128xf32>
    %106 = arith.addf %102, %105 : vector<8x128xf32>
    %c0_62 = arith.constant 0 : index
    %c0_63 = arith.constant 0 : index
    %107 = vector.load %arg16[%c0_62, %c0_63] : memref<8x128xf32, #tpu.memory_space<vmem>>, vector<8x128xf32>
    tpu.vector_store %arg16[%c0_62, %c0_63], %106 {strides = array<i32>} : memref<8x128xf32, #tpu.memory_space<vmem>>, vector<8x128xf32>,
    %c1_i32 = arith.constant 1 : i32
    %108 = arith.cmpi eq, %arg1, %c1_i32 : i32
    %109 = arith.extui %108 : i1 to i32
    %c0_i32_64 = arith.constant 0 : i32
    %110 = arith.cmpi ne, %109, %c0_i32_64 : i32
    scf.if %110 {
      %111 = vector.shape_cast %106 : vector<8x128xf32> to vector<1x8x128xf32>
      %c0_65 = arith.constant 0 : index
      %c0_66 = arith.constant 0 : index
      %c0_67 = arith.constant 0 : index
      %112 = vector.load %arg15[%c0_65, %c0_66, %c0_67] : memref<1x8x128xf32, #tpu.memory_space<vmem>>, vector<1x8x128xf32>
      tpu.vector_store %arg15[%c0_65, %c0_66, %c0_67], %111 {strides = array<i32>} : memref<1x8x128xf32, #tpu.memory_space<vmem>>, vector<1x8x128xf32>,
    } else {
    }
    return
  }
  func.func @transform_0(%arg0: i32, %arg1: i32) -> (i32, i32, i32) {
    %c0_i32 = arith.constant 0 : i32
    %c0_i32_0 = arith.constant 0 : i32
    %c0_i32_1 = arith.constant 0 : i32
    return %arg0, %c0_i32, %c0_i32_0 : i32, i32, i32
  }
  func.func @transform_1(%arg0: i32, %arg1: i32) -> (i32, i32, i32) {
    %c0_i32 = arith.constant 0 : i32
    %c0_i32_0 = arith.constant 0 : i32
    %c0_i32_1 = arith.constant 0 : i32
    return %arg1, %c0_i32, %c0_i32_0 : i32, i32, i32
  }
  func.func @transform_2(%arg0: i32, %arg1: i32) -> (i32, i32, i32) {
    %c0_i32 = arith.constant 0 : i32
    %c0_i32_0 = arith.constant 0 : i32
    %c0_i32_1 = arith.constant 0 : i32
    return %arg1, %c0_i32, %c0_i32_0 : i32, i32, i32
  }
  func.func @transform_3(%arg0: i32, %arg1: i32) -> (i32, i32, i32) {
    %c0_i32 = arith.constant 0 : i32
    %c0_i32_0 = arith.constant 0 : i32
    %c0_i32_1 = arith.constant 0 : i32
    return %arg1, %c0_i32, %c0_i32_0 : i32, i32, i32
  }
  func.func @transform_4(%arg0: i32, %arg1: i32) -> (i32, i32, i32) {
    %c0_i32 = arith.constant 0 : i32
    %c0_i32_0 = arith.constant 0 : i32
    %c0_i32_1 = arith.constant 0 : i32
    return %arg1, %c0_i32, %c0_i32_0 : i32, i32, i32
  }
  func.func @transform_5(%arg0: i32, %arg1: i32) -> (i32, i32, i32) {
    %c0_i32 = arith.constant 0 : i32
    %c0_i32_0 = arith.constant 0 : i32
    %c0_i32_1 = arith.constant 0 : i32
    return %arg1, %c0_i32, %c0_i32_0 : i32, i32, i32
  }
  func.func @transform_6(%arg0: i32, %arg1: i32) -> (i32, i32, i32) {
    %c0_i32 = arith.constant 0 : i32
    %c0_i32_0 = arith.constant 0 : i32
    %c0_i32_1 = arith.constant 0 : i32
    return %arg1, %c0_i32, %c0_i32_0 : i32, i32, i32
  }
  func.func @transform_7(%arg0: i32, %arg1: i32) -> (i32, i32, i32) {
    %c0_i32 = arith.constant 0 : i32
    %c0_i32_0 = arith.constant 0 : i32
    %c0_i32_1 = arith.constant 0 : i32
    return %arg1, %c0_i32, %c0_i32_0 : i32, i32, i32
  }
  func.func @transform_8(%arg0: i32, %arg1: i32) -> (i32, i32, i32) {
    %c0_i32 = arith.constant 0 : i32
    %c0_i32_0 = arith.constant 0 : i32
    %c0_i32_1 = arith.constant 0 : i32
    return %arg1, %c0_i32, %c0_i32_0 : i32, i32, i32
  }
  func.func @transform_9(%arg0: i32, %arg1: i32) -> (i32, i32, i32) {
    %c0_i32 = arith.constant 0 : i32
    %c0_i32_0 = arith.constant 0 : i32
    %c0_i32_1 = arith.constant 0 : i32
    return %arg1, %c0_i32, %c0_i32_0 : i32, i32, i32
  }
  func.func @transform_10(%arg0: i32, %arg1: i32) -> (i32, i32, i32) {
    %c0_i32 = arith.constant 0 : i32
    %c0_i32_0 = arith.constant 0 : i32
    %c0_i32_1 = arith.constant 0 : i32
    return %arg1, %c0_i32, %c0_i32_0 : i32, i32, i32
  }
  func.func @transform_11(%arg0: i32, %arg1: i32) -> (i32, i32, i32) {
    %c0_i32 = arith.constant 0 : i32
    %c0_i32_0 = arith.constant 0 : i32
    %c0_i32_1 = arith.constant 0 : i32
    return %arg1, %c0_i32, %c0_i32_0 : i32, i32, i32
  }
  func.func @transform_12(%arg0: i32, %arg1: i32) -> (i32, i32, i32) {
    %c0_i32 = arith.constant 0 : i32
    %c0_i32_0 = arith.constant 0 : i32
    %c0_i32_1 = arith.constant 0 : i32
    return %arg1, %c0_i32, %c0_i32_0 : i32, i32, i32
  }
  func.func @transform_13(%arg0: i32, %arg1: i32) -> (i32, i32, i32) {
    %c0_i32 = arith.constant 0 : i32
    %c0_i32_0 = arith.constant 0 : i32
    %c0_i32_1 = arith.constant 0 : i32
    return %arg0, %c0_i32, %c0_i32_0 : i32, i32, i32
  }
}

</mosaic_0001>

<bundles_post_ra>
// kernel: tpu_custom_call.1
= control target key start
LH: loop header
LB: loop body
LE: loop exit
PB: predicated region body
PF: predicated region fallthrough
CT: control target
= control target key end

     0   :  { %s4982_s0 = inlined_call_operand.hbm [shape: f32[2,8,128], index: 0, kind: input, shape index: {}]   ;;  %s4983_s1 = inlined_call_operand.hbm [shape: f32[2,128,128], index: 1, kind: input, shape index: {}]   ;;  %s4984_s2 = inlined_call_operand.hbm [shape: f32[2,128,128], index: 2, kind: input, shape index: {}]   ;;  %s4985_s3 = inlined_call_operand.hbm [shape: f32[2,128,128], index: 3, kind: input, shape index: {}]   ;;  %s4986_s4 = inlined_call_operand.hbm [shape: f32[2,128,128], index: 4, kind: input, shape index: {}]   ;;  %s4987_s5 = inlined_call_operand.vmem [shape: f32[2,1,128], index: 5, kind: input, shape index: {}]   ;;  %s4988_s6 = inlined_call_operand.vmem [shape: f32[2,1,128], index: 6, kind: input, shape index: {}]   ;;  %s4989_s7 = inlined_call_operand.hbm [shape: f32[2,128,128], index: 7, kind: input, shape index: {}]   ;;  %s4990_s8 = inlined_call_operand.vmem [shape: f32[2,1,128], index: 8, kind: input, shape index: {}]   ;;  %s4991_s9 = inlined_call_operand.hbm [shape: f32[2,128,128], index: 9, kind: input, shape index: {}]   ;;  %s4992_s10 = inlined_call_operand.vmem [shape: f32[2,1,128], index: 10, kind: input, shape index: {}]   ;;  %s4993_s11 = inlined_call_operand.vmem [shape: f32[2,1,128], index: 11, kind: input, shape index: {}]   ;;  %s4994_s12 = inlined_call_operand.vmem [shape: f32[2,1,128], index: 12, kind: input, shape index: {}]   ;;  %s4995_s13 = inlined_call_operand.hbm [shape: f32[2,8,128], index: 13, kind: output, shape index: {}]  }
   0x1   :  { %5029 = sst [smem:[#allocation39_spill]] %s4982_s0 }
   0x2   :  { %5030 = sst [smem:[#allocation40_spill]] %s4983_s1 }
   0x3   :  { %5031 = sst [smem:[#allocation41_spill]] %s4984_s2 }
   0x4   :  { %5032 = sst [smem:[#allocation42_spill]] %s4985_s3 }
   0x5   :  { %5033 = sst [smem:[#allocation43_spill]] %s4986_s4 }
   0x6   :  { %5034 = sst [smem:[#allocation44_spill]] %s4987_s5 }
   0x7   :  { %5035 = sst [smem:[#allocation45_spill]] %s4988_s6 }
   0x8   :  { %5036 = sst [smem:[#allocation46_spill]] %s4989_s7 }
   0x9   :  { %5037 = sst [smem:[#allocation47_spill]] %s4990_s8 }
   0xa   :  { %5038 = sst [smem:[#allocation48_spill]] %s4991_s9 }
   0xb   :  { %5039 = sst [smem:[#allocation49_spill]] %s4992_s10 }
   0xc   :  { %5040 = sst [smem:[#allocation50_spill]] %s4993_s11 }
   0xd   :  { %5041 = sst [smem:[#allocation51_spill]] %s4994_s12 }
   0xe   :  { %5042 = sst [smem:[#allocation52_spill]] %s4995_s13 }
   0xf   :  { %18 = vsyncpa [#allocation4], 0 }
  0x10   :  { %20 = vsyncpa [#allocation4 + $0x1], 0 }
  0x11   :  { %21 = vsyncpa [#allocation7], 0 }
  0x12   :  { %23 = vsyncpa [#allocation7 + $0x1], 0 }
  0x13   :  { %24 = vsyncpa [#allocation10], 0 }
  0x14   :  { %26 = vsyncpa [#allocation10 + $0x1], 0 }
  0x15   :  { %27 = vsyncpa [#allocation13], 0 }
  0x16   :  { %29 = vsyncpa [#allocation13 + $0x1], 0 }
  0x17   :  { %30 = vsyncpa [#allocation5], 0 }
  0x18   :  { %32 = vsyncpa [#allocation5 + $0x1], 0  ;;  %s4077_s25 = smov 0   ;;  %s4079_s26 = smov 0  }
  0x19   :  { %s4081_s27 = smov 0   ;;  %s4083_s28 = smov 0  }
  0x1a   :  { %s4085_s29 = smov 0   ;;  %s4087_s30 = smov 0  }
  0x1b   :  { %s4089_s14 = smov 0   ;;  %s4091_s15 = smov 0  }
  0x1c   :  { %s4093_s16 = smov 0   ;;  %s4095_s17 = smov 0  }
  0x1d   :  { %s4097_s18 = smov 0  }
  0x1e LB: > { %5043 = sst [smem:[#allocation21_spill]] %s3951_s26  ;;  %p4998_p0 = scmp.eq.s32.totalorder %s3987_s18, 0  ;;  %s3987_s18 = sphi %s4097_s18, %s38_s18   ;;  %s3983_s17 = sphi %s4095_s17, %s5126_s17   ;;  %s3979_s16 = sphi %s4093_s16, %s5125_s16   ;;  %s3975_s15 = sphi %s4091_s15, %s5124_s15   ;;  %s3971_s14 = sphi %s4089_s14, %s5123_s14   ;;  %s3967_s30 = sphi %s4087_s30, %s5122_s30   ;;  %s3963_s29 = sphi %s4085_s29, %s5121_s29   ;;  %s3959_s28 = sphi %s4083_s28, %s5120_s28   ;;  %s3955_s27 = sphi %s4081_s27, %s5119_s27   ;;  %s3951_s26 = sphi %s4079_s26, %s5118_s26   ;;  %s3947_s25 = sphi %s4077_s25, %s5117_s25  }
  0x1f   : > { %5044 = sst [smem:[#allocation22_spill]] %s3955_s27  ;;  %p90_p1 = scmp.ne.s32.totalorder %s3955_s27, %s3951_s26 }
  0x20   : > { %5045 = sst [smem:[#allocation23_spill]] %s3959_s28  ;;  %p4997_p2 = scmp.lt.s32.totalorder %s3987_s18, 4 }
  0x21   : > { %5046 = sst [smem:[#allocation24_spill]] %s3963_s29  ;;  %s4138_s20 = sand.u32 1, %s3987_s18  }
  0x22   : > { %5047 = sst [smem:[#allocation25_spill]] %s3967_s30  ;;  %p92_p3 = por %p90_p1, %p4998_p0 }
  0x23   : > { %5048 = sst [smem:[#allocation26_spill]] %s3971_s14  ;;  %s452_s21 = sand.u32 1, %s3955_s27  }
  0x24   : > { %5049 = sst [smem:[#allocation27_spill]] %s3975_s15  ;;  %s4144_s22 = sshll.u32 %s3979_s16, 11 }
  0x25   : > { %5050 = sst [smem:[#allocation28_spill]] %s3979_s16  ;;  %s4146_s23 = sshll.u32 %s452_s21, 7 }
  0x26   : > { %5051 = sst [smem:[#allocation29_spill]] %s3983_s17  ;;  %s5053_s1 = sld [smem:[#allocation40_spill]] }
  0x27   : > { %5052 = sst [smem:[#allocation30_spill]] %s3987_s18  ;;  %p4156_p4 = pnand %p4997_p2, %p92_p3 }
  0x28   : > { %s454_s12 = scalar_lea.vmem [#allocation6], %s4146_s23 }
  0x29   : > { %s5054_s19 = scalar_select %p4156_p4, 1, 0 }
  0x2a   : > { %s461_s11 = sshll.u32 %s454_s12, 4  ;;  %p4169_p7 = pneg %p4156_p4  ;;  %s4161_s11 = int_to_ptr.vmem [resolvable:$true] %s461_s11 }
  0x2c   : > { %s4152_s15 = scalar_lea.hbm %s5053_s1, %s4144_s22  ;;  %s3648_s6 = scalar_lea.hbm %s5053_s1, 4096 }
  0x2d   : > { %s3643_s13 = scalar_lea.hbm %s4152_s15, 2048  ;;  %p3649_p10 = scmp.lt.u32.totalorder %s4152_s15, %s5053_s1 }
  0x2e   : > { %p3644_p6 = scmp.ne.s32.totalorder %s4152_s15, %s3643_s13  ;;  %p3650_p11 = scmp.lt.u32.totalorder %s3648_s6, %s3643_s13 }
  0x2f   : > { %p3652_p13 = scmp.lt.u32.totalorder %s3643_s13, %s4152_s15 }
  0x30   : > { %p3646_p8 = pnand %p4169_p7, %p3644_p6  ;;  %p3651_p12 = por %p3650_p11, %p3649_p10 }
  0x32   : > { %p3647_p9 = pneg %p3646_p8  ;;  %p3653_p1 = por %p3652_p13, %p3651_p12 }
  0x34   : > { %p3654_p3 = pnand %p3653_p1, %p3647_p9 }
  0x36   : > { %3657 = shalt.err (!%p3654_p3)
}
  0x37   : > { %s3658_s21 = scalar_lea.vmem %s4161_s11, 2048  ;;  %s3989_s8 = smov [#allocation6]  }
  0x38   : > { %p3659_p6 = scmp.ne.s32.totalorder %s4161_s11, %s3658_s21  ;;  %s3663_s10 = sshll.u32 %s3989_s8, 4  ;;  %s3664_s10 = int_to_ptr.vmem [resolvable:$false] %s3663_s10 }
  0x39   : > { %s3665_s5 = scalar_lea.vmem %s3664_s10, 4096  ;;  %p3666_p0 = scmp.lt.s32.totalorder %s4161_s11, %s3664_s10 }
  0x3a   : > { %p3661_p8 = pnand %p3659_p6, %p4169_p7  ;;  %p3667_p5 = scmp.lt.s32.totalorder %s3665_s5, %s3658_s21 }
  0x3c   : > { %p3662_p2 = pneg %p3661_p8  ;;  %p3668_p10 = por %p3667_p5, %p3666_p0 }
  0x3e   : > { %p3669_p11 = pnand %p3668_p10, %p3662_p2 }
  0x40   : > { %3672 = shalt.err (!%p3669_p11)
}
  0x41   : > { %s5000_s6 = smov 128   ;;  %s5002_s13 = smov 8  }
  0x42   : > { %s5056_s21 = scalar_lea.sflag [#allocation7], %s4138_s20  ;;  %p610_p0 = scmp.lt.s32.totalorder %s3987_s18, 5 }
  0x43   : > { %3503 = dma.hbm_to_vmem [thread:$0]  (!%p4156_p4), %s4152_s15, 2048, %s4161_s11, %s5056_s21, %s5000_s6, %s5000_s6, %s5002_s13  }
  0x44   : > { %s5057_s3 = sld [smem:[#allocation42_spill]]  ;;  %p5058_p2 = scmp.ge.s32.totalorder %s3987_s18, 1 }
  0x45   : > { %s496_s1 = scalar_lea.vmem [#allocation9], %s4146_s23  ;;  %s5005_s11 = scalar_lea.sflag [#allocation10], %s4138_s20 }
  0x46   : > { %p4206_p5 = pnand %p5058_p2, %p610_p0  ;;  %s503_s14 = sshll.u32 %s496_s1, 4  ;;  %s4211_s14 = int_to_ptr.vmem [resolvable:$true] %s503_s14 }
  0x48   : > { %s5059_s5 = scalar_select %p4206_p5, 1, 0 }
  0x4a   : > { %s4202_s10 = scalar_lea.hbm %s5057_s3, %s4144_s22  ;;  %5060 = sst [smem:[#allocation31_spill]] %s5059_s5 }
  0x4b   : > { %s3673_s15 = scalar_lea.hbm %s4202_s10, 2048  ;;  %s3678_s8 = scalar_lea.hbm %s5057_s3, 4096 }
  0x4c   : > { %p3674_p9 = scmp.ne.s32.totalorder %s4202_s10, %s3673_s15  ;;  %p3679_p1 = scmp.lt.u32.totalorder %s4202_s10, %s5057_s3 }
  0x4d   : > { %p3680_p3 = scmp.lt.u32.totalorder %s3678_s8, %s3673_s15  ;;  %p3682_p8 = scmp.lt.u32.totalorder %s3673_s15, %s4202_s10 }
  0x4e   : > { %p3676_p12 = pnand %p3674_p9, %p4169_p7 }
  0x4f   : > { %p3681_p6 = por %p3680_p3, %p3679_p1 }
  0x50   : > { %p3677_p13 = pneg %p3676_p12 }
  0x51   : > { %p3683_p10 = por %p3682_p8, %p3681_p6 }
  0x53   : > { %p3684_p11 = pnand %p3683_p10, %p3677_p13 }
  0x55   : > { %3687 = shalt.err (!%p3684_p11)
}
  0x56   : > { %s3688_s1 = scalar_lea.vmem %s4211_s14, 2048  ;;  %s3992_s21 = smov [#allocation9]  }
  0x57   : > { %p3689_p0 = scmp.ne.s32.totalorder %s4211_s14, %s3688_s1  ;;  %s3693_s12 = sshll.u32 %s3992_s21, 4  ;;  %s3694_s12 = int_to_ptr.vmem [resolvable:$false] %s3693_s12 }
  0x58   : > { %s3695_s6 = scalar_lea.vmem %s3694_s12, 4096  ;;  %p3696_p12 = scmp.lt.s32.totalorder %s4211_s14, %s3694_s12 }
  0x59   : > { %p3691_p2 = pnand %p3689_p0, %p4169_p7  ;;  %p3697_p5 = scmp.lt.s32.totalorder %s3695_s6, %s3688_s1 }
  0x5b   : > { %p3692_p9 = pneg %p3691_p2  ;;  %p3698_p1 = por %p3697_p5, %p3696_p12 }
  0x5d   : > { %p3699_p3 = pnand %p3698_p1, %p3692_p9 }
  0x5f   : > { %3702 = shalt.err (!%p3699_p3)
}
  0x60   : > { %s5061_s13 = smov 8   ;;  %s5062_s15 = smov 128  }
  0x61   : > { %3509 = dma.hbm_to_vmem [thread:$0]  (!%p4156_p4), %s4202_s10, 2048, %s4211_s14, %s5005_s11, %s5062_s15, %s5062_s15, %s5061_s13  }
  0x62   : > { %s5063_s7 = sld [smem:[#allocation46_spill]]  ;;  %s550_s12 = scalar_lea.vmem [#allocation12], %s4146_s23 }
  0x63   : > { %s557_s6 = sshll.u32 %s550_s12, 4  ;;  %s5006_s3 = scalar_lea.sflag [#allocation13], %s4138_s20  ;;  %s4247_s6 = int_to_ptr.vmem [resolvable:$true] %s557_s6 }
  0x68   : > { %s4244_s1 = scalar_lea.hbm %s5063_s7, %s4144_s22  ;;  %s3708_s8 = scalar_lea.hbm %s5063_s7, 4096 }
  0x69   : > { %s3703_s5 = scalar_lea.hbm %s4244_s1, 2048  ;;  %p3709_p8 = scmp.lt.u32.totalorder %s4244_s1, %s5063_s7 }
  0x6a   : > { %p3704_p5 = scmp.ne.s32.totalorder %s4244_s1, %s3703_s5  ;;  %p3710_p10 = scmp.lt.u32.totalorder %s3708_s8, %s3703_s5 }
  0x6b   : > { %p3712_p0 = scmp.lt.u32.totalorder %s3703_s5, %s4244_s1 }
  0x6c   : > { %p3706_p13 = pnand %p3704_p5, %p4169_p7  ;;  %p3711_p11 = por %p3710_p10, %p3709_p8 }
  0x6e   : > { %p3707_p6 = pneg %p3706_p13  ;;  %p3713_p2 = por %p3712_p0, %p3711_p11 }
  0x70   : > { %p3714_p9 = pnand %p3713_p2, %p3707_p6 }
  0x72   : > { %3717 = shalt.err (!%p3714_p9)
}
  0x73   : > { %s3718_s12 = scalar_lea.vmem %s4247_s6, 2048  ;;  %s3993_s14 = smov [#allocation12]  }
  0x74   : > { %p3719_p12 = scmp.ne.s32.totalorder %s4247_s6, %s3718_s12  ;;  %s3723_s10 = sshll.u32 %s3993_s14, 4  ;;  %s3724_s10 = int_to_ptr.vmem [resolvable:$false] %s3723_s10 }
  0x75   : > { %s3725_s11 = scalar_lea.vmem %s3724_s10, 4096  ;;  %p3726_p5 = scmp.lt.s32.totalorder %s4247_s6, %s3724_s10 }
  0x76   : > { %p3721_p1 = pnand %p3719_p12, %p4169_p7  ;;  %p3727_p13 = scmp.lt.s32.totalorder %s3725_s11, %s3718_s12 }
  0x78   : > { %p3722_p3 = pneg %p3721_p1  ;;  %p3728_p8 = por %p3727_p13, %p3726_p5 }
  0x7a   : > { %p3729_p10 = pnand %p3728_p8, %p3722_p3 }
  0x7c   : > { %3732 = shalt.err (!%p3729_p10)
}
  0x7d   : > { %3515 = dma.hbm_to_vmem [thread:$0]  (!%p4156_p4), %s4244_s1, 2048, %s4247_s6, %s5006_s3, %s5062_s15, %s5062_s15, %s5061_s13  }
  0x7e   : > { %s4277_s5 = sadd.s32 4294967295, %s3987_s18   ;;  %s2899_s8 = sadd.s32 4294967294, %s3987_s18  }
  0x7f   : > { %s47_s21 = sadd.s32 1, %s3979_s16  ;;  %s50_s12 = sadd.s32 1, %s3983_s17 }
  0x80   : > { %p48_p6 = scmp.ge.s32.totalorder %s47_s21, 2  ;;  %s57_s14 = sadd.s32 1, %s3967_s30 }
  0x81   : > { %p64_p11 = scmp.ne.s32.totalorder %s3967_s30, %s3963_s29  ;;  %p70_p0 = scmp.ne.s32.totalorder %s3963_s29, %s3959_s28 }
  0x82   : > { %s5128_s21 = smov (%p48_p6, %s47_s21), 0  ;;  %s5130_s12 = smov (!%p48_p6, %s50_s12), %s3983_s17 }
  0x83   : > { %5064 = sst [smem:[#allocation32_spill]] %s5128_s21  ;;  %p5065_p2 = scmp.eq.s32.totalorder %s3987_s18, 0 }
  0x84   : > { %p71_p12 = scmp.eq.s32.totalorder %s4277_s5, 0  ;;  %p52_p1 = scmp.ge.s32.totalorder %s5130_s12, 2 }
  0x85   : > { %p4295_p9 = por %p5065_p2, %p64_p11  ;;  %s80_s6 = ssub.s32 %s3979_s16, %s5128_s21 }
  0x86   : > { %p4305_p3 = por %p71_p12, %p70_p0  ;;  %p81_p5 = scmp.eq.s32.totalorder %s80_s6, 0 }
  0x87   : > { %s5132_s12 = smov (%p52_p1, %s5130_s12), 0  ;;  %s5069_s11 = sadd.s32 1, %s3955_s27 }
  0x88   : > { %s5067_s10 = scalar_select %p4305_p3, 1, 0 }
  0x89   : > { %5068 = sst [smem:[#allocation33_spill]] %s5132_s12  ;;  %s54_s7 = ssub.s32 %s3983_s17, %s5132_s12 }
  0x8a   : > { %s4314_s3 = scalar_select %p81_p5, %s3955_s27, %s5069_s11  }
  0x8b   : > { %p96_p13 = scmp.ne.s32.totalorder %s3951_s26, %s3947_s25  ;;  %p55_p8 = scmp.eq.s32.totalorder %s54_s7, 0 }
  0x8c   : > { %5070 = sst [smem:[#allocation34_spill]] %s4314_s3  ;;  %p406_p10 = scmp.eq.s32.totalorder %s4277_s5, 3 }
  0x8d   : > { %p4321_p6 = por %p96_p13, %p71_p12  ;;  %p412_p2 = scmp.eq.s32.totalorder %s2899_s8, 3 }
  0x8e   : > { %s4326_s16 = scalar_select %p55_p8, %s3967_s30, %s57_s14  }
  0x8f   : > { %s5071_s21 = scalar_select %p4321_p6, 1, 0 }
  0x90   : > { %5073 = sst [smem:[#allocation36_spill]] %s4326_s16  ;;  %p4331_p1 = por %p406_p10, %p64_p11 }
  0x91   : > { %5072 = sst [smem:[#allocation35_spill]] %s5071_s21  ;;  %p4338_p5 = por %p412_p2, %p70_p0 }
  0x92   : > { %s5074_s6 = scalar_select %p4331_p1, 1, 0 }
  0x93   : > { %s5076_s11 = scalar_select %p4338_p5, 1, 0 }
  0x94   : > { %5075 = sst [smem:[#allocation37_spill]] %s5074_s6  ;;  %s432_s25 = sand.u32 1, %s3967_s30  }
  0x95   : > { %5077 = sst [smem:[#allocation38_spill]] %s5076_s11  ;;  %s2903_s7 = sshll.u32 %s3983_s17, 7 }
  0x96   : > { %s2902_s12 = sshll.u32 %s432_s25, 3  ;;  %s5078_s0 = sld [smem:[#allocation39_spill]] }
  0x97   : > { %s436_s8 = scalar_lea.vmem [#allocation3], %s2902_s12  ;;  %p5079_p11 = scmp.lt.s32.totalorder %s3987_s18, 4 }
  0x98   : > { %s443_s14 = sshll.u32 %s436_s8, 4  ;;  %s5081_s2 = sld [smem:[#allocation41_spill]]  ;;  %s4357_s14 = int_to_ptr.vmem [resolvable:$true] %s443_s14 }
  0x99   : > { %p4353_p0 = pnand %p5079_p11, %p4295_p9 }
  0x9b   : > { %p3735_p13 = pneg %p4353_p0 }
  0x9c   : > { %s4347_s21 = scalar_lea.hbm %s5078_s0, %s2903_s7  ;;  %s433_s7 = scalar_lea.sflag [#allocation4], %s432_s25 }
  0x9d   : > { %s3733_s30 = scalar_lea.hbm %s4347_s21, 128  ;;  %s3738_s8 = scalar_lea.hbm %s5078_s0, 256 }
  0x9e   : > { %s4363_s27 = scalar_lea.hbm %s5081_s2, %s4144_s22  ;;  %p3734_p12 = scmp.ne.s32.totalorder %s4347_s21, %s3733_s30 }
  0x9f   : > { %p3739_p10 = scmp.lt.u32.totalorder %s4347_s21, %s5078_s0  ;;  %p3740_p2 = scmp.lt.u32.totalorder %s3738_s8, %s3733_s30 }
  0xa0   : > { %p3736_p9 = pnand %p3735_p13, %p3734_p12  ;;  %p3742_p5 = scmp.lt.u32.totalorder %s3733_s30, %s4347_s21 }
  0xa1   : > { %p3741_p11 = por %p3740_p2, %p3739_p10 }
  0xa2   : > { %p3737_p8 = pneg %p3736_p9 }
  0xa3   : > { %p3743_p1 = por %p3742_p5, %p3741_p11 }
  0xa5   : > { %p3744_p6 = pnand %p3743_p1, %p3737_p8 }
  0xa7   : > { %3747 = shalt.err (!%p3744_p6)
}
  0xa8   : > { %s3748_s17 = scalar_lea.vmem %s4357_s14, 128  ;;  %s3994_s25 = smov [#allocation3]  }
  0xa9   : > { %p3749_p12 = scmp.ne.s32.totalorder %s4357_s14, %s3748_s17  ;;  %s3753_s3 = sshll.u32 %s3994_s25, 4  ;;  %s3754_s3 = int_to_ptr.vmem [resolvable:$false] %s3753_s3 }
  0xaa   : > { %s3755_s28 = scalar_lea.vmem %s3754_s3, 256  ;;  %p3756_p4 = scmp.lt.s32.totalorder %s4357_s14, %s3754_s3 }
  0xab   : > { %p3751_p9 = pnand %p3749_p12, %p3735_p13  ;;  %p3757_p10 = scmp.lt.s32.totalorder %s3755_s28, %s3748_s17 }
  0xad   : > { %p3752_p3 = pneg %p3751_p9  ;;  %p3758_p2 = por %p3757_p10, %p3756_p4 }
  0xaf   : > { %p3759_p5 = pnand %p3758_p2, %p3752_p3 }
  0xb1   : > { %3762 = shalt.err (!%p3759_p5)
}
  0xb2   : > { %3500 = dma.hbm_to_vmem [thread:$0]  (!%p4353_p0), %s4347_s21, 128, %s4357_s14, %s433_s7  }
  0xb3   : > { %s475_s30 = scalar_lea.vmem [#allocation8], %s4146_s23  ;;  %s5082_s4 = sld [smem:[#allocation43_spill]] }
  0xb4   : > { %s482_s11 = sshll.u32 %s475_s30, 4  ;;  %s3763_s16 = scalar_lea.hbm %s4363_s27, 2048  ;;  %s4391_s11 = int_to_ptr.vmem [resolvable:$true] %s482_s11 }
  0xb5   : > { %p3764_p4 = scmp.ne.s32.totalorder %s4363_s27, %s3763_s16  ;;  %s3768_s3 = scalar_lea.hbm %s5081_s2, 4096 }
  0xb6   : > { %p3769_p1 = scmp.lt.u32.totalorder %s4363_s27, %s5081_s2  ;;  %p3770_p0 = scmp.lt.u32.totalorder %s3768_s3, %s3763_s16 }
  0xb7   : > { %p3766_p3 = pnand %p3764_p4, %p4169_p7  ;;  %p3772_p8 = scmp.lt.u32.totalorder %s3763_s16, %s4363_s27 }
  0xb8   : > { %p3771_p13 = por %p3770_p0, %p3769_p1 }
  0xb9   : > { %s4397_s8 = scalar_lea.hbm %s5082_s4, %s4144_s22  ;;  %p3767_p6 = pneg %p3766_p3 }
  0xba   : > { %p3773_p11 = por %p3772_p8, %p3771_p13 }
  0xbc   : > { %p3774_p12 = pnand %p3773_p11, %p3767_p6 }
  0xbe   : > { %3777 = shalt.err (!%p3774_p12)
}
  0xbf   : > { %s3778_s14 = scalar_lea.vmem %s4391_s11, 2048  ;;  %s3995_s7 = smov [#allocation8]  }
  0xc0   : > { %p3779_p9 = scmp.ne.s32.totalorder %s4391_s11, %s3778_s14  ;;  %s3783_s30 = sshll.u32 %s3995_s7, 4  ;;  %s3784_s30 = int_to_ptr.vmem [resolvable:$false] %s3783_s30 }
  0xc1   : > { %s3785_s12 = scalar_lea.vmem %s3784_s30, 4096  ;;  %p3786_p5 = scmp.lt.s32.totalorder %s4391_s11, %s3784_s30 }
  0xc2   : > { %p3781_p10 = pnand %p3779_p9, %p4169_p7  ;;  %p3787_p4 = scmp.lt.s32.totalorder %s3785_s12, %s3778_s14 }
  0xc4   : > { %p3782_p2 = pneg %p3781_p10  ;;  %p3788_p3 = por %p3787_p4, %p3786_p5 }
  0xc6   : > { %p3789_p1 = pnand %p3788_p3, %p3782_p2 }
  0xc8   : > { %3792 = shalt.err (!%p3789_p1)
}
  0xc9   : > { %p5083_p6 = scmp.ne.s32.totalorder %s5054_s19, 0  ;;  %s5084_s1 = scalar_lea.sflag [#allocation7], %s4138_s20 }
  0xca   : > { %s517_s16 = scalar_lea.vmem [#allocation11], %s4146_s23  ;;  %s5085_s9 = sld [smem:[#allocation48_spill]] }
  0xcb   : > { %3506 = dma.hbm_to_vmem [thread:$0]  (!%p5083_p6), %s4363_s27, 2048, %s4391_s11, %s5084_s1, %s5062_s15, %s5062_s15, %s5061_s13  }
  0xcc   : > { %s524_s17 = sshll.u32 %s517_s16, 4  ;;  %s3793_s21 = scalar_lea.hbm %s4397_s8, 2048  ;;  %s4426_s17 = int_to_ptr.vmem [resolvable:$true] %s524_s17 }
  0xcd   : > { %p3794_p0 = scmp.ne.s32.totalorder %s4397_s8, %s3793_s21  ;;  %s3798_s30 = scalar_lea.hbm %s5082_s4, 4096 }
  0xce   : > { %p3799_p11 = scmp.lt.u32.totalorder %s4397_s8, %s5082_s4  ;;  %p3800_p12 = scmp.lt.u32.totalorder %s3798_s30, %s3793_s21 }
  0xcf   : > { %p3796_p13 = pnand %p3794_p0, %p4169_p7  ;;  %p3802_p10 = scmp.lt.u32.totalorder %s3793_s21, %s4397_s8 }
  0xd0   : > { %s4432_s28 = scalar_lea.hbm %s5085_s9, %s4144_s22  ;;  %p3801_p9 = por %p3800_p12, %p3799_p11 }
  0xd1   : > { %p3797_p8 = pneg %p3796_p13 }
  0xd2   : > { %p3803_p2 = por %p3802_p10, %p3801_p9 }
  0xd4   : > { %p3804_p5 = pnand %p3803_p2, %p3797_p8 }
  0xd6   : > { %3807 = shalt.err (!%p3804_p5)
}
  0xd7   : > { %s3808_s22 = scalar_lea.vmem %s4426_s17, 2048  ;;  %s3996_s11 = smov [#allocation11]  }
  0xd8   : > { %p3809_p4 = scmp.ne.s32.totalorder %s4426_s17, %s3808_s22  ;;  %s3813_s1 = sshll.u32 %s3996_s11, 4  ;;  %s3814_s1 = int_to_ptr.vmem [resolvable:$false] %s3813_s1 }
  0xd9   : > { %s3815_s16 = scalar_lea.vmem %s3814_s1, 4096  ;;  %p3816_p0 = scmp.lt.s32.totalorder %s4426_s17, %s3814_s1 }
  0xda   : > { %p3811_p3 = pnand %p3809_p4, %p4169_p7  ;;  %p3817_p13 = scmp.lt.s32.totalorder %s3815_s16, %s3808_s22 }
  0xdc   : > { %p3812_p1 = pneg %p3811_p3  ;;  %p3818_p11 = por %p3817_p13, %p3816_p0 }
  0xde   : > { %p3819_p12 = pnand %p3818_p11, %p3812_p1 }
  0xe0   : > { %3822 = shalt.err (!%p3819_p12)
}
  0xe1   : > { %s5086_s25 = scalar_lea.sflag [#allocation10], %s4138_s20  ;;  %s577_s3 = scalar_lea.vmem [#allocation14], %s4146_s23 }
  0xe2   : > { %3512 = dma.hbm_to_vmem [thread:$0]  (!%p5083_p6), %s4397_s8, 2048, %s4426_s17, %s5086_s25, %s5062_s15, %s5062_s15, %s5061_s13  }
  0xe3   : > { %s584_s21 = sshll.u32 %s577_s3, 4  ;;  %s3823_s14 = scalar_lea.hbm %s4432_s28, 2048  ;;  %s4461_s21 = int_to_ptr.vmem [resolvable:$true] %s584_s21 }
  0xe4   : > { %p3824_p8 = scmp.ne.s32.totalorder %s4432_s28, %s3823_s14  ;;  %s3828_s12 = scalar_lea.hbm %s5085_s9, 4096 }
  0xe5   : > { %p3829_p2 = scmp.lt.u32.totalorder %s4432_s28, %s5085_s9  ;;  %p3830_p5 = scmp.lt.u32.totalorder %s3828_s12, %s3823_s14 }
  0xe6   : > { %p3826_p9 = pnand %p3824_p8, %p4169_p7  ;;  %p3832_p3 = scmp.lt.u32.totalorder %s3823_s14, %s4432_s28 }
  0xe7   : > { %p3831_p4 = por %p3830_p5, %p3829_p2 }
  0xe8   : > { %p3827_p10 = pneg %p3826_p9 }
  0xe9   : > { %p3833_p1 = por %p3832_p3, %p3831_p4 }
  0xeb   : > { %p3834_p0 = pnand %p3833_p1, %p3827_p10 }
  0xed   : > { %3837 = shalt.err (!%p3834_p0)
}
  0xee   : > { %s3838_s23 = scalar_lea.vmem %s4461_s21, 2048  ;;  %s3997_s8 = smov [#allocation14]  }
  0xef   : > { %p3839_p13 = scmp.ne.s32.totalorder %s4461_s21, %s3838_s23  ;;  %s3843_s17 = sshll.u32 %s3997_s8, 4  ;;  %s3844_s17 = int_to_ptr.vmem [resolvable:$false] %s3843_s17 }
  0xf0   : > { %s3845_s11 = scalar_lea.vmem %s3844_s17, 4096  ;;  %p3846_p8 = scmp.lt.s32.totalorder %s4461_s21, %s3844_s17 }
  0xf1   : > { %p3841_p11 = pnand %p3839_p13, %p4169_p7  ;;  %p3847_p9 = scmp.lt.s32.totalorder %s3845_s11, %s3838_s23 }
  0xf3   : > { %p3842_p12 = pneg %p3841_p11  ;;  %p3848_p2 = por %p3847_p9, %p3846_p8 }
  0xf5   : > { %p3849_p5 = pnand %p3848_p2, %p3842_p12 }
  0xf7   : > { %3852 = shalt.err (!%p3849_p5)
}
  0xf8   : > { %s5087_s1 = scalar_lea.sflag [#allocation13], %s4138_s20  ;;  %s5088_s24 = sld [smem:[#allocation31_spill]] }
  0xf9   : > { %3518 = dma.hbm_to_vmem [thread:$0]  (!%p5083_p6), %s4432_s28, 2048, %s4461_s21, %s5087_s1, %s5062_s15, %s5062_s15, %s5061_s13  }
  0xfe   : > { %p5089_p7 = scmp.ne.s32.totalorder %s5088_s24, 0 }
  0xff   : > { %s4492_s16 = sand.u32 (!%p5089_p7), 1, %s3963_s29   ;;  %p5090_p10 = scmp.ne.s32.totalorder (!%p5089_p7), %s5067_s10, 0 }
 0x100   : > { %614 = sbr.rel (%p5089_p7) target bundleno = 2344 (0x928), region = 72  ;;  %s5022_s25 = sshll.u32 (!%p5089_p7), %s4492_s16, 3 }
 0x101   : > { %s617_s19 = scalar_lea.sflag (!%p5089_p7), [#allocation4], %s4492_s16  ;;  %s4498_s3 = scalar_lea.vmem (!%p5089_p7), [#allocation3], %s5022_s25 }
 0x107   : > { %3926 = dma.done.wait (%p5090_p10), %s617_s19, 128  }
 0x108   : > { %3928 = vsyncadd (%p5090_p10), %s617_s19, 4294967168  ;;  %s5091_s20 = sld [smem:[#allocation35_spill]]  ;;  %s625_s13 = sand.u32 1, %s4277_s5  }
 0x109   : > { %s627_s15 = sand.u32 1, %s3951_s26   ;;  %s626_s21 = scalar_lea.sflag [#allocation7], %s625_s13 }
 0x10a   : > { %s2924_s28 = sshll.u32 %s627_s15, 7 }
 0x10b   : > { %s4506_s14 = scalar_lea.vmem [#allocation6], %s2924_s28 }
 0x10e   : > { %p5092_p6 = scmp.ne.s32.totalorder %s5091_s20, 0 }
 0x110   : > { %3930 = dma.done.wait (%p5092_p6), %s626_s21, 4096  }
 0x111   : > { %3932 = vsyncadd (%p5092_p6), %s626_s21, 4294963200  ;;  %s4512_s7 = scalar_lea.vmem [#allocation8], %s2924_s28  ;;  %s644_s30 = scalar_lea.sflag [#allocation10], %s625_s13 }
 0x112   : > { %s4514_s10 = scalar_lea.vmem [#allocation9], %s2924_s28 }
 0x113   : > { %3934 = dma.done.wait (%p5092_p6), %s644_s30, 4096  }
 0x114   : > { %3936 = vsyncadd (%p5092_p6), %s644_s30, 4294963200  ;;  %s4520_s5 = scalar_lea.vmem [#allocation11], %s2924_s28  ;;  %s662_s12 = scalar_lea.sflag [#allocation13], %s625_s13 }
 0x115   : > { %s4522_s27 = scalar_lea.vmem [#allocation12], %s2924_s28 }
 0x116   : > { %3938 = dma.done.wait (%p5092_p6), %s662_s12, 4096  }
 0x117   : > { %3940 = vsyncadd (%p5092_p6), %s662_s12, 4294963200  ;;  %s5093_s22 = sld [smem:[#allocation26_spill]]  ;;  %s5095_s20 = sld [smem:[#allocation45_spill]] }
 0x118   : > { %s5096_s30 = sld [smem:[#allocation47_spill]]  ;;  %s5097_s2 = sld [smem:[#allocation49_spill]] }
 0x119   : > { %s5098_s17 = sld [smem:[#allocation50_spill]]  ;;  %s5099_s6 = sld [smem:[#allocation51_spill]] }
 0x11a   : > { %s4556_s1 = scalar_lea.vmem [#allocation14], %s2924_s28  ;;  %s5100_s24 = sshll.u32 %s4492_s16, 3 }
 0x11b   : > { %s4560_s19 = scalar_lea.vmem [#allocation15], %s5100_s24 }
 0x11d   : > { %p765_p4 = scmp.lt.s32.totalorder %s5093_s22, 1  ;;  %p2931_p3 = scmp.ne.s32.totalorder %s5093_s22, 0 }
 0x11e   : > { %v787_v0 = vld [vmem:[%s4498_s3] sm:$0xff] (!%p2931_p3) }
 0x11f   : > { %s4530_s23 = scalar_select %p765_p4, %s5093_s22, 1 }
 0x120   : > { %786 = sbr.rel (%p2931_p3) target bundleno = 295 (0x127), region = 104  ;;  %788 = vst [vmem:[#allocation2] sm:$0xff] (!%p2931_p3), %v787_v0 }
 0x121   : > { %s770_s13 = scalar_lea.vmem %s5095_s20, %s4530_s23  ;;  %s773_s12 = scalar_lea.vmem %s5096_s30, %s4530_s23 }
 0x122   : > { %s776_s4 = scalar_lea.vmem %s5097_s2, %s4530_s23  ;;  %s779_s29 = scalar_lea.vmem %s5098_s17, %s4530_s23 }
 0x123   : > { %s782_s11 = scalar_lea.vmem %s5099_s6, %s4530_s23 }
 0x127 PF: > { %v876_v1 = vld [vmem:[%s4512_s7] sm:$0xff]  ;;  %v877_v2 = vld [vmem:[%s4512_s7 + $0x8] sm:$0xff]  ;;  %v3998_v4 = vmov 0.0|0.0   ;;  %v878_v7 = vld [vmem:[%s4512_s7 + $0x10] sm:$0xff]  ;;  %vm3999_vm0 = vmmov 0   ;;  %v4000_v12 = vmov 0.0  }
 0x128   : > { %v790_v3 = vld [vmem:[%s4506_s14] sm:$0xff]  ;;  %3361 = vmatprep.subr.bf16.mxu1 %v3998_v4  ;;  %v3362_v5 = vpack.c.bf16 %v877_v2, %v876_v1  ;;  %3337 = vmatprep.subr.bf16.mxu0 %v3998_v4  ;;  %v791_v6 = vld [vmem:[%s4506_s14 + $0x8] sm:$0xff]  ;;  %v879_v8 = vld [vmem:[%s4512_s7 + $0x18] sm:$0xff]  ;;  %s4001_s0 = smov 32   ;;  %s4002_s2 = smov 96   ;;  %vm1486_vm1 = vcmask 261120  }
 0x129   : > { %v3338_v9 = vpack.c.bf16 %v791_v6, %v790_v3  ;;  %v792_v10 = vld [vmem:[%s4506_s14 + $0x10] sm:$0xff]  ;;  %v793_v11 = vld [vmem:[%s4506_s14 + $0x18] sm:$0xff]  ;;  %3154 = vmatprep.mubr.msk.f32.mxu1 %vm3999_vm0, %v4000_v12  ;;  %3119 = vmatprep.mubr.msk.f32.mxu0 %vm3999_vm0, %v4000_v12  ;;  %v3365_v13 = vpack.c.bf16 %v879_v8, %v878_v7  ;;  %v880_v15 = vld [vmem:[%s4512_s7 + $0x20] sm:$0xff]  ;;  %s4003_s9 = smov 64   ;;  %vm1791_vm2 = vcmask 64512   ;;  %vm2277_vm3 = vcmask 523264  }
 0x12a   : > { %3363 = vmatpush3.bf16.msra.mxu1 %v3362_v5  ;;  %v3341_v14 = vpack.c.bf16 %v793_v11, %v792_v10  ;;  %v881_v16 = vld [vmem:[%s4512_s7 + $0x28] sm:$0xff]  ;;  %v794_v17 = vld [vmem:[%s4506_s14 + $0x20] sm:$0xff]  ;;  %v882_v21 = vld [vmem:[%s4512_s7 + $0x30] sm:$0xff]  ;;  %vm2279_vm4 = vcmask 785408   ;;  %s5101_s6 = sld [smem:[#allocation44_spill]]  ;;  %s5108_s8 = sld [smem:[#allocation26_spill]] }
 0x12b   : > { %3339 = vmatpush3.bf16.msra.mxu0 %v3338_v9  ;;  %3364 = vmatprep.subr.bf16.mxu1 %v3998_v4  ;;  %v795_v18 = vld [vmem:[%s4506_s14 + $0x28] sm:$0xff]  ;;  %v3368_v19 = vpack.c.bf16 %v881_v16, %v880_v15  ;;  %v883_v22 = vld [vmem:[%s4512_s7 + $0x38] sm:$0xff]  ;;  %v796_v23 = vld [vmem:[%s4506_s14 + $0x30] sm:$0xff] }
 0x12c   : > { %3340 = vmatprep.subr.bf16.mxu0 %v3998_v4  ;;  %v3344_v20 = vpack.c.bf16 %v795_v18, %v794_v17  ;;  %v797_v24 = vld [vmem:[%s4506_s14 + $0x38] sm:$0xff]  ;;  %v3371_v25 = vpack.c.bf16 %v883_v22, %v882_v21  ;;  %v884_v27 = vld [vmem:[%s4512_s7 + $0x40] sm:$0xff]  ;;  %v885_v28 = vld [vmem:[%s4512_s7 + $0x48] sm:$0xff]  ;;  %v4004_v18 = vmov 1983009808  }
 0x12d   : > { %v3347_v26 = vpack.c.bf16 %v797_v24, %v796_v23  ;;  %v798_v29 = vld [vmem:[%s4506_s14 + $0x40] sm:$0xff]  ;;  %v799_v30 = vld [vmem:[%s4506_s14 + $0x48] sm:$0xff]  ;;  %v3374_v31 = vpack.c.bf16 %v885_v28, %v884_v27  ;;  %v886_v33 = vld [vmem:[%s4512_s7 + $0x50] sm:$0xff]  ;;  %v4005_v21 = vmov 1934713408  }
 0x12e   : > { %3366 = vmatpush3.bf16.msra.mxu1 %v3365_v13  ;;  %v3350_v32 = vpack.c.bf16 %v799_v30, %v798_v29  ;;  %v887_v34 = vld [vmem:[%s4512_s7 + $0x58] sm:$0xff]  ;;  %v800_v35 = vld [vmem:[%s4506_s14 + $0x50] sm:$0xff]  ;;  %v888_v39 = vld [vmem:[%s4512_s7 + $0x60] sm:$0xff]  ;;  %v1093_v22 = vunpack.c.l.s4 %v4005_v21 }
 0x12f   : > { %3342 = vmatpush3.bf16.msra.mxu0 %v3341_v14  ;;  %3367 = vmatprep.subr.bf16.mxu1 %v3998_v4  ;;  %v801_v36 = vld [vmem:[%s4506_s14 + $0x58] sm:$0xff]  ;;  %v3377_v37 = vpack.c.bf16 %v887_v34, %v886_v33  ;;  %v889_v40 = vld [vmem:[%s4512_s7 + $0x68] sm:$0xff]  ;;  %v802_v41 = vld [vmem:[%s4506_s14 + $0x60] sm:$0xff] }
 0x130   : > { %3343 = vmatprep.subr.bf16.mxu0 %v3998_v4  ;;  %v3353_v38 = vpack.c.bf16 %v801_v36, %v800_v35  ;;  %v803_v42 = vld [vmem:[%s4506_s14 + $0x68] sm:$0xff]  ;;  %v3380_v43 = vpack.c.bf16 %v889_v40, %v888_v39  ;;  %v890_v45 = vld [vmem:[%s4512_s7 + $0x70] sm:$0xff]  ;;  %v891_v46 = vld [vmem:[%s4512_s7 + $0x78] sm:$0xff]  ;;  %v1094_v27 = vunpack.c.0.s8 %v1093_v22  ;;  %s5102_s25 = scalar_lea.vmem %s5101_s6, %s4530_s23  ;;  %p2958_p1 = scmp.ne.s32.totalorder %s5108_s8, 1 }
 0x131   : > { %v3356_v44 = vpack.c.bf16 %v803_v42, %v802_v41  ;;  %v804_v47 = vld [vmem:[%s4506_s14 + $0x70] sm:$0xff]  ;;  %v805_v48 = vld [vmem:[%s4506_s14 + $0x78] sm:$0xff]  ;;  %v3383_v49 = vpack.c.bf16 %v891_v46, %v890_v45  ;;  %v4616_v51 = vld [vmem:[#allocation2] sm:$0xff] }
 0x132   : > { %3369 = vmatpush3.bf16.msra.mxu1 %v3368_v19  ;;  %v3359_v50 = vpack.c.bf16 %v805_v48, %v804_v47  ;;  %v962_v56 = vld [vmem:[%s4514_s10] sm:$0xff]  ;;  %v963_v57 = vld [vmem:[%s4514_s10 + $0x8] sm:$0xff]  ;;  %v964_v58 = vld [vmem:[%s4514_s10 + $0x10] sm:$0xff]  ;;  %v1061_v19 = vunpack.c.l.s4 %v4004_v18 }
 0x133   : > { %3345 = vmatpush3.bf16.msra.mxu0 %v3344_v20  ;;  %3370 = vmatprep.subr.bf16.mxu1 %v3998_v4  ;;  %v3386_v59 = vpack.c.bf16 %v963_v57, %v962_v56  ;;  %v965_v60 = vld [vmem:[%s4514_s10 + $0x18] sm:$0xff]  ;;  %v966_v62 = vld [vmem:[%s4514_s10 + $0x20] sm:$0xff]  ;;  %v967_v63 = vld [vmem:[%s4514_s10 + $0x28] sm:$0xff]  ;;  %v1063_v20 = vlaneseq }
 0x134   : > { %3346 = vmatprep.subr.bf16.mxu0 %v3998_v4  ;;  %v3389_v61 = vpack.c.bf16 %v965_v60, %v964_v58  ;;  %v3392_v0 = vpack.c.bf16 %v967_v63, %v966_v62  ;;  %v968_v1 = vld [vmem:[%s4514_s10 + $0x30] sm:$0xff]  ;;  %v969_v2 = vld [vmem:[%s4514_s10 + $0x38] sm:$0xff]  ;;  %v970_v5 = vld [vmem:[%s4514_s10 + $0x40] sm:$0xff]  ;;  %v1062_v23 = vunpack.c.0.s8 %v1061_v19 }
 0x135   : > { %v3395_v3 = vpack.c.bf16 %v969_v2, %v968_v1  ;;  %v971_v6 = vld [vmem:[%s4514_s10 + $0x48] sm:$0xff]  ;;  %v972_v8 = vld [vmem:[%s4514_s10 + $0x50] sm:$0xff]  ;;  %v973_v9 = vld [vmem:[%s4514_s10 + $0x58] sm:$0xff]  ;;  %v1064_v24 = vshrl.u32 %v1063_v20, 7 }
 0x136   : > { %3372 = vmatpush3.bf16.msra.mxu1 %v3371_v25  ;;  %v3398_v7 = vpack.c.bf16 %v971_v6, %v970_v5  ;;  %v3401_v10 = vpack.c.bf16 %v973_v9, %v972_v8  ;;  %v974_v11 = vld [vmem:[%s4514_s10 + $0x60] sm:$0xff]  ;;  %v975_v13 = vld [vmem:[%s4514_s10 + $0x68] sm:$0xff]  ;;  %v976_v15 = vld [vmem:[%s4514_s10 + $0x70] sm:$0xff] }
 0x137   : > { %3348 = vmatpush3.bf16.msra.mxu0 %v3347_v26  ;;  %3373 = vmatprep.subr.bf16.mxu1 %v3998_v4  ;;  %v3404_v14 = vpack.c.bf16 %v975_v13, %v974_v11  ;;  %v977_v16 = vld [vmem:[%s4514_s10 + $0x78] sm:$0xff]  ;;  %v4669_v28 = vsub.s32 %v1062_v23, %v1064_v24  ;;  %v4673_v35 = vsub.s32 %v1094_v27, %v1064_v24 }
 0x138   : > { %3349 = vmatprep.subr.bf16.mxu0 %v3998_v4  ;;  %v3407_v17 = vpack.c.bf16 %v977_v16, %v976_v15 }
 0x13a   : > { %3375 = vmatpush3.bf16.msra.mxu1 %v3374_v31 }
 0x13b   : > { %3351 = vmatpush3.bf16.msra.mxu0 %v3350_v32  ;;  %3376 = vmatprep.subr.bf16.mxu1 %v3998_v4 }
 0x13c   : > { %3352 = vmatprep.subr.bf16.mxu0 %v3998_v4 }
 0x13e   : > { %3378 = vmatpush3.bf16.msra.mxu1 %v3377_v37 }
 0x13f   : > { %3354 = vmatpush3.bf16.msra.mxu0 %v3353_v38  ;;  %3379 = vmatprep.subr.bf16.mxu1 %v3998_v4 }
 0x140   : > { %3355 = vmatprep.subr.bf16.mxu0 %v3998_v4 }
 0x142   : > { %3381 = vmatpush3.bf16.msra.mxu1 %v3380_v43 }
 0x143   : > { %3357 = vmatpush3.bf16.msra.mxu0 %v3356_v44  ;;  %3382 = vmatprep.subr.bf16.mxu1 %v3998_v4 }
 0x144   : > { %3358 = vmatprep.subr.bf16.mxu0 %v3998_v4 }
 0x146   : > { %3384 = vmatpush3.bf16.msra.mxu1 %v3383_v49 }
 0x147   : > { %3360 = vmatpush3.bf16.msra.mxu0 %v3359_v50  ;;  %3192 = vmatprep.subr.mxu1 %v4000_v12 }
 0x148   : > { %3385 = vmatprep.subr.bf16.mxu0 %v3998_v4 }
 0x149   : > { %3155 = vmatmul.mubr.f32.vlgmr.msra.gmra.mrb[0].mxu1 %v4616_v51 }
 0x14a   : > { %3120 = vmatmul.mubr.f32.vlgmr.msra.gmra.mrb[0].mxu0 %v4616_v51  ;;  %3194 = vmatprep.mubr.msk.f32.mxu1 %vm3999_vm0, %v4000_v12 }
 0x14b   : > { %3189 = vmatprep.mubr.msk.f32.mxu0 %vm3999_vm0, %v4000_v12  ;;  %3387 = vmatpush3.bf16.msra.mxu0 %v3386_v59 }
 0x14c   : > { %3388 = vmatprep.subr.bf16.mxu0 %v3998_v4 }
 0x14f   : > { %3390 = vmatpush3.bf16.msra.mxu0 %v3389_v61 }
 0x150   : > { %3391 = vmatprep.subr.bf16.mxu0 %v3998_v4 }
 0x153   : > { %3393 = vmatpush3.bf16.msra.mxu0 %v3392_v0 }
 0x154   : > { %3394 = vmatprep.subr.bf16.mxu0 %v3998_v4 }
 0x157   : > { %3396 = vmatpush3.bf16.msra.mxu0 %v3395_v3 }
 0x158   : > { %3397 = vmatprep.subr.bf16.mxu0 %v3998_v4 }
 0x15b   : > { %3399 = vmatpush3.bf16.msra.mxu0 %v3398_v7 }
 0x15c   : > { %3400 = vmatprep.subr.bf16.mxu0 %v3998_v4 }
 0x15f   : > { %3402 = vmatpush3.bf16.msra.mxu0 %v3401_v10 }
 0x160   : > { %3403 = vmatprep.subr.bf16.mxu0 %v3998_v4 }
 0x163   : > { %3405 = vmatpush3.bf16.msra.mxu0 %v3404_v14 }
 0x164   : > { %3406 = vmatprep.subr.bf16.mxu0 %v3998_v4 }
 0x167   : > { %3408 = vmatpush3.bf16.msra.mxu0 %v3407_v17 }
 0x168   : > { %3409 = vmatprep.subr.bf16.mxu0 %v3998_v4 }
 0x16a   : > { %3190 = vmatmul.mubr.f32.vlgmr.msra.gmra.mrb[2].mxu0 %v4616_v51 }
 0x16b   : > { %3264 = vmatprep.mubr.msk.f32.mxu0 %vm3999_vm0, %v4000_v12 }
 0x21c   : > { %v4626_v52 = vpop.f32.mrb[0].mxu1 }
 0x21d   : > { %1201 = vrot.lane.b32.xlu1 %v4626_v52, %s4001_s0  ;;  %1195 = vrot.lane.b32.xlu0 %v4626_v52, %s4002_s2  ;;  %v3156_v53 = vpop.f32.mrb[1].mxu1  ;;  %v4632_v54 = vpop.f32.mrb[0].mxu0 }
 0x21e   : > { %v3121_v55 = vpop.f32.mrb[1].mxu0 }
 0x221   : > { %1198 = vrot.lane.b32.xlu0 %v4626_v52, %s4003_s9  ;;  %1049 = vrot.lane.b32.xlu1 %v4632_v54, %s4002_s2 }
 0x225   : > { %1052 = vrot.lane.b32.xlu0 %v4632_v54, %s4003_s9  ;;  %1055 = vrot.lane.b32.xlu1 %v4632_v54, %s4001_s0 }
 0x28f   : > { %v1202_v25 = vpop.permute.xlu1 %1201  ;;  %v1196_v26 = vpop.permute.xlu0 %1195 }
 0x290   : > { %v1220_v29 = vcombine.low %v1196_v26, %v1202_v25  ;;  %v1221_v30 = vcombine.high %v1196_v26, %v1202_v25 }
 0x292   : > { %v1228_v36 = vrot.slane %v1220_v29, %v4669_v28  ;;  %v1235_v37 = vrot.slane %v1221_v30, %v4669_v28 }
 0x293   : > { %v1199_v31 = vpop.permute.xlu0 %1198  ;;  %v1050_v32 = vpop.permute.xlu1 %1049 }
 0x294   : > { %v1204_v33 = vcombine.low %v4626_v52, %v1199_v31  ;;  %v1205_v34 = vcombine.high %v4626_v52, %v1199_v31 }
 0x296   : > { %v1212_v38 = vrot.slane %v1204_v33, %v4669_v28  ;;  %v1219_v39 = vrot.slane %v1205_v34, %v4669_v28 }
 0x297   : > { %v1053_v40 = vpop.permute.xlu0 %1052  ;;  %v1056_v41 = vpop.permute.xlu1 %1055 }
 0x298   : > { %v1236_v42 = vcombine.low %v1212_v38, %v1228_v36  ;;  %v1237_v43 = vcombine.high %v1212_v38, %v1228_v36  ;;  %v1252_v44 = vcombine.low %v1219_v39, %v1235_v37  ;;  %v1253_v45 = vcombine.high %v1219_v39, %v1235_v37 }
 0x299   : > { %v1058_v46 = vcombine.low %v4632_v54, %v1053_v40  ;;  %v1059_v47 = vcombine.high %v4632_v54, %v1053_v40  ;;  %v1074_v48 = vcombine.low %v1050_v32, %v1056_v41  ;;  %v1075_v49 = vcombine.high %v1050_v32, %v1056_v41 }
 0x29a   : > { %v1244_v50 = vrot.slane %v1236_v42, %v4673_v35  ;;  %v1251_v52 = vrot.slane %v1237_v43, %v4673_v35  ;;  %v1260_v53 = vrot.slane %v1252_v44, %v4673_v35  ;;  %v1267_v55 = vrot.slane %v1253_v45, %v4673_v35 }
 0x29b   : > { %v1066_v56 = vrot.slane %v1058_v46, %v4669_v28  ;;  %v1073_v57 = vrot.slane %v1059_v47, %v4669_v28  ;;  %v1082_v58 = vrot.slane %v1074_v48, %v4669_v28  ;;  %v1089_v59 = vrot.slane %v1075_v49, %v4669_v28  ;;  %v4729_v47 = vpop.f32.mrb[2].mxu0 }
 0x29c   : > { %v1272_v60 = vcombine.low %v1244_v50, %v1251_v52  ;;  %v2934_v54 = vcombine.high %v1244_v50, %v1251_v52  ;;  %v1288_v61 = vcombine.low %v1260_v53, %v1267_v55  ;;  %v2935_v62 = vcombine.high %v1260_v53, %v1267_v55  ;;  %v3191_v48 = vpop.f32.mrb[3].mxu0 }
 0x29d   : > { %v1090_v63 = vcombine.low %v1066_v56, %v1082_v58  ;;  %v1091_v0 = vcombine.high %v1066_v56, %v1082_v58  ;;  %v1106_v1 = vcombine.low %v1073_v57, %v1089_v59  ;;  %v1107_v2 = vcombine.high %v1073_v57, %v1089_v59 }
 0x29e   : > { %v1279_v3 = vrot.slane %v1272_v60, %v4669_v28  ;;  %v1287_v5 = vrot.slane %v2934_v54, %v4669_v28  ;;  %v1295_v6 = vrot.slane %v1288_v61, %v4669_v28  ;;  %v1303_v7 = vrot.slane %v2935_v62, %v4669_v28 }
 0x29f   : > { %v1098_v8 = vrot.slane %v1090_v63, %v4673_v35  ;;  %v1105_v9 = vrot.slane %v1091_v0, %v4673_v35  ;;  %v1114_v10 = vrot.slane %v1106_v1, %v4673_v35  ;;  %v1121_v11 = vrot.slane %v1107_v2, %v4673_v35 }
 0x2a0   : > { %v1304_v13 = vcombine.low %v1279_v3, %v1287_v5  ;;  %v1320_v14 = vcombine.low %v1295_v6, %v1303_v7  ;;  %v1305_v29 = vcombine.high %v1279_v3, %v1287_v5  ;;  %v1321_v30 = vcombine.high %v1295_v6, %v1303_v7 }
 0x2a1   : > { %v1126_v15 = vcombine.low %v1098_v8, %v1105_v9  ;;  %v2932_v16 = vcombine.high %v1098_v8, %v1105_v9  ;;  %v1142_v17 = vcombine.low %v1114_v10, %v1121_v11  ;;  %v2933_v18 = vcombine.high %v1114_v10, %v1121_v11 }
 0x2a2   : > { %v1312_v19 = vrot.slane %v1304_v13, %v4673_v35  ;;  %v1328_v20 = vrot.slane %v1320_v14, %v4673_v35  ;;  %v1319_v38 = vrot.slane %v1305_v29, %v4673_v35  ;;  %v1335_v39 = vrot.slane %v1321_v30, %v4673_v35 }
 0x2a3   : > { %v1133_v21 = vrot.slane %v1126_v15, %v4669_v28  ;;  %v1141_v22 = vrot.slane %v2932_v16, %v4669_v28  ;;  %v1149_v23 = vrot.slane %v1142_v17, %v4669_v28  ;;  %v1157_v24 = vrot.slane %v2933_v18, %v4669_v28 }
 0x2a4   : > { %v1336_v25 = vcombine.low %v1312_v19, %v1328_v20  ;;  %v1337_v37 = vcombine.high %v1312_v19, %v1328_v20  ;;  %v1338_v43 = vcombine.low %v1319_v38, %v1335_v39  ;;  %v1339_v45 = vcombine.high %v1319_v38, %v1335_v39 }
 0x2a5   : > { %v1158_v26 = vcombine.low %v1133_v21, %v1141_v22  ;;  %v1174_v27 = vcombine.low %v1149_v23, %v1157_v24  ;;  %v1159_v33 = vcombine.high %v1133_v21, %v1141_v22  ;;  %v1175_v34 = vcombine.high %v1149_v23, %v1157_v24 }
 0x2a6   : > { %3193 = vmatpush3.xpose.msk.msra.mxu1 %vm1486_vm1, %v1336_v25 }
 0x2a7   : > { %3197 = vmatprep.subr.mxu1 %v4000_v12  ;;  %v1166_v31 = vrot.slane %v1158_v26, %v4673_v35  ;;  %v1182_v32 = vrot.slane %v1174_v27, %v4673_v35  ;;  %v1173_v41 = vrot.slane %v1159_v33, %v4673_v35  ;;  %v1189_v42 = vrot.slane %v1175_v34, %v4673_v35 }
 0x2a9   : > { %v1190_v36 = vcombine.low %v1166_v31, %v1182_v32  ;;  %v1191_v40 = vcombine.high %v1166_v31, %v1182_v32  ;;  %v1192_v44 = vcombine.low %v1173_v41, %v1189_v42  ;;  %v1193_v46 = vcombine.high %v1173_v41, %v1189_v42 }
 0x2ab   : > { %3195 = vmatmul.mubr.msk.f32.vlgmr.msra.gmra.mrb[2].mxu1 %vm1486_vm1, %v1190_v36 }
 0x2ac   : > { %3198 = vmatpush3.xpose.msk.msra.mxu1 %vm1486_vm1, %v1337_v37  ;;  %3199 = vmatprep.mubr.msk.f32.mxu1 %vm3999_vm0, %v4000_v12 }
 0x2ad   : > { %3202 = vmatprep.subr.mxu1 %v4000_v12 }
 0x2af   : > { %3200 = vmatmul.mubr.msk.f32.vlgmr.msra.gmra.mrb[4].mxu1 %vm1486_vm1, %v1191_v40 }
 0x2b0   : > { %3203 = vmatpush3.xpose.msk.msra.mxu1 %vm1486_vm1, %v1338_v43  ;;  %3204 = vmatprep.mubr.msk.f32.mxu1 %vm3999_vm0, %v4000_v12 }
 0x2b1   : > { %3207 = vmatprep.subr.mxu1 %v4000_v12 }
 0x2b3   : > { %3205 = vmatmul.mubr.msk.f32.vlgmr.msra.gmra.mrb[6].mxu1 %vm1486_vm1, %v1192_v44 }
 0x2b4   : > { %3208 = vmatpush3.xpose.msk.msra.mxu1 %vm1486_vm1, %v1339_v45  ;;  %3209 = vmatprep.mubr.msk.f32.mxu1 %vm3999_vm0, %v4000_v12 }
 0x2b5   : > { %3212 = vmatprep.subr.mxu1 %v4000_v12 }
 0x2b7   : > { %3210 = vmatmul.mubr.msk.f32.vlgmr.msra.gmra.mrb[8].mxu1 %vm1486_vm1, %v1193_v46 }
 0x2b8   : > { %3214 = vmatprep.mubr.msk.f32.mxu1 %vm3999_vm0, %v4000_v12 }
 0x37e   : > { %v1559_v49 = vpop.f32.mrb[2].mxu1 }
 0x37f   : > { %v3196_v50 = vpop.f32.mrb[3].mxu1  ;;  %v1792_v52 = vsel %vm1791_vm2, %v1559_v49, -inf }
 0x380   : > { %1793 = vmax.xlane.f32.xlu0 %v1792_v52 }
 0x382   : > { %v1635_v53 = vpop.f32.mrb[4].mxu1 }
 0x383   : > { %v3201_v55 = vpop.f32.mrb[5].mxu1  ;;  %v1795_v56 = vsel %vm1791_vm2, %v1635_v53, -inf }
 0x384   : > { %1796 = vmax.xlane.f32.xlu1 %v1795_v56 }
 0x386   : > { %v1711_v57 = vpop.f32.mrb[6].mxu1 }
 0x387   : > { %v3206_v58 = vpop.f32.mrb[7].mxu1  ;;  %v1798_v59 = vsel %vm1791_vm2, %v1711_v57, -inf }
 0x388   : > { %1799 = vmax.xlane.f32.xlu0 %v1798_v59 }
 0x38a   : > { %v1787_v60 = vpop.f32.mrb[8].mxu1 }
 0x38b   : > { %v3211_v54 = vpop.f32.mrb[9].mxu1  ;;  %v1801_v61 = vsel %vm1791_vm2, %v1787_v60, -inf }
 0x38c   : > { %1802 = vmax.xlane.f32.xlu0 %v1801_v61 }
 0x395   : > { %1341 = vrot.lane.b32.xlu1 %v4729_v47, %s4002_s2 }
 0x40d   : > { %v1794_v62 = vpop.xlane.xlu0 %1793 }
 0x40e   : > { %v1804_v63 = vsub.f32 %v1559_v49, %v1794_v62 }
 0x410   : > { %v1808_v0 = vmul.f32 1.442695, %v1804_v63 }
 0x411   : > { %v1797_v1 = vpop.xlane.xlu1 %1796 }
 0x412   : > { %3623 = vpow2.f32 %v1808_v0  ;;  %v1805_v2 = vsub.f32 %v1635_v53, %v1797_v1 }
 0x414   : > { %v1810_v3 = vmul.f32 1.442695, %v1805_v2 }
 0x415   : > { %v1800_v9 = vpop.xlane.xlu0 %1799  ;;  %v1342_v20 = vpop.permute.xlu1 %1341 }
 0x416   : > { %3625 = vpow2.f32 %v1810_v3  ;;  %v1806_v10 = vsub.f32 %v1711_v57, %v1800_v9 }
 0x418   : > { %v1812_v13 = vmul.f32 1.442695, %v1806_v10 }
 0x419   : > { %v1803_v11 = vpop.xlane.xlu0 %1802 }
 0x41a   : > { %v1807_v14 = vsub.f32 %v1787_v60, %v1803_v11  ;;  %3627 = vpow2.f32 %v1812_v13  ;;  %v2281_v11 = vld [vmem:[%s4520_s5] sm:$0xff]  ;;  %v2282_v13 = vld [vmem:[%s4520_s5 + $0x8] sm:$0xff] }
 0x41c   : > { %v3624_v5 = vpop.eup %3623  ;;  %v1814_v15 = vmul.f32 1.442695, %v1807_v14  ;;  %v2283_v14 = vld [vmem:[%s4520_s5 + $0x10] sm:$0xff] }
 0x41d   : > { %v1816_v6 = vsel %vm1791_vm2, %v3624_v5, 0.0 }
 0x41e   : > { %1817 = vadd.xlane.f32.xlu1 %v1816_v6  ;;  %3629 = vpow2.f32 %v1814_v15  ;;  %v3410_v15 = vpack.c.bf16 %v2282_v13, %v2281_v11  ;;  %v2387_v13 = vld [vmem:[%s4522_s27 + $0x18] sm:$0xff] }
 0x420   : > { %v4738_v7 = vpop.eup %3625  ;;  %3411 = vmatpush3.bf16.msra.mxu0 %v3410_v15 }
 0x421   : > { %v1819_v8 = vsel %vm1791_vm2, %v4738_v7, 0.0  ;;  %3412 = vmatprep.subr.bf16.mxu0 %v3998_v4 }
 0x422   : > { %1820 = vadd.xlane.f32.xlu0 %v1819_v8 }
 0x424   : > { %v4746_v16 = vpop.eup %3627 }
 0x425   : > { %v1822_v17 = vsel %vm1791_vm2, %v4746_v16, 0.0 }
 0x428   : > { %v4750_v18 = vpop.eup %3629 }
 0x429   : > { %v1825_v19 = vsel %vm1791_vm2, %v4750_v18, 0.0 }
 0x42f   : > { %1347 = vrot.lane.b32.xlu1 %v4729_v47, %s4001_s0 }
 0x438   : > { %1344 = vrot.lane.b32.xlu0 %v4729_v47, %s4003_s9 }
 0x453   : > { %1823 = vadd.xlane.f32.xlu1 %v1822_v17 }
 0x457   : > { %1826 = vadd.xlane.f32.xlu0 %v1825_v19  ;;  %v2286_v19 = vld [vmem:[%s4520_s5 + $0x28] sm:$0xff] }
 0x4ab   : > { %v1818_v21 = vpop.xlane.xlu1 %1817 }
 0x4ac   : > { %3631 = vrcp.f32 %v1818_v21  ;;  %v2287_v21 = vld [vmem:[%s4520_s5 + $0x30] sm:$0xff] }
 0x4af   : > { %v1821_v22 = vpop.xlane.xlu0 %1820  ;;  %v1348_v23 = vpop.permute.xlu1 %1347 }
 0x4b0   : > { %v1366_v24 = vcombine.low %v1342_v20, %v1348_v23  ;;  %v1367_v25 = vcombine.high %v1342_v20, %v1348_v23  ;;  %3633 = vrcp.f32 %v1821_v22  ;;  %v2288_v22 = vld [vmem:[%s4520_s5 + $0x38] sm:$0xff] }
 0x4b1   : > { %v3419_v23 = vpack.c.bf16 %v2288_v22, %v2287_v21  ;;  %v2388_v22 = vld [vmem:[%s4522_s27 + $0x20] sm:$0xff] }
 0x4b2   : > { %v1374_v30 = vrot.slane %v1366_v24, %v4669_v28  ;;  %v1381_v31 = vrot.slane %v1367_v25, %v4669_v28  ;;  %v2289_v24 = vld [vmem:[%s4520_s5 + $0x40] sm:$0xff]  ;;  %v2290_v25 = vld [vmem:[%s4520_s5 + $0x48] sm:$0xff] }
 0x4b3   : > { %v1345_v26 = vpop.permute.xlu0 %1344 }
 0x4b4   : > { %v1350_v27 = vcombine.low %v4729_v47, %v1345_v26  ;;  %v1351_v29 = vcombine.high %v4729_v47, %v1345_v26  ;;  %v3422_v26 = vpack.c.bf16 %v2290_v25, %v2289_v24 }
 0x4b6   : > { %v1358_v32 = vrot.slane %v1350_v27, %v4669_v28  ;;  %v1365_v33 = vrot.slane %v1351_v29, %v4669_v28  ;;  %v3632_v55 = vpop.eup %3631  ;;  %v2291_v27 = vld [vmem:[%s4520_s5 + $0x50] sm:$0xff]  ;;  %v2292_v29 = vld [vmem:[%s4520_s5 + $0x58] sm:$0xff] }
 0x4b7   : > { %v1829_v61 = vmul.f32 %v3632_v55, %v3624_v5 }
 0x4b8   : > { %v1382_v34 = vcombine.low %v1358_v32, %v1374_v30  ;;  %v1383_v36 = vcombine.high %v1358_v32, %v1374_v30  ;;  %v1398_v37 = vcombine.low %v1365_v33, %v1381_v31  ;;  %v1399_v38 = vcombine.high %v1365_v33, %v1381_v31  ;;  %v2293_v31 = vld [vmem:[%s4520_s5 + $0x60] sm:$0xff]  ;;  %v2294_v32 = vld [vmem:[%s4520_s5 + $0x68] sm:$0xff] }
 0x4b9   : > { %v3425_v30 = vpack.c.bf16 %v2292_v29, %v2291_v27  ;;  %v3428_v33 = vpack.c.bf16 %v2294_v32, %v2293_v31  ;;  %v2392_v32 = vld [vmem:[%s4522_s27 + $0x40] sm:$0xff] }
 0x4ba   : > { %v1390_v39 = vrot.slane %v1382_v34, %v4673_v35  ;;  %v1397_v40 = vrot.slane %v1383_v36, %v4673_v35  ;;  %v1406_v41 = vrot.slane %v1398_v37, %v4673_v35  ;;  %v1413_v42 = vrot.slane %v1399_v38, %v4673_v35  ;;  %v3634_v54 = vpop.eup %3633 }
 0x4bb   : > { %v1831_v1 = vmul.f32 %v3634_v54, %v4738_v7 }
 0x4bc   : > { %v1418_v43 = vcombine.low %v1390_v39, %v1397_v40  ;;  %v2936_v44 = vcombine.high %v1390_v39, %v1397_v40  ;;  %v1434_v45 = vcombine.low %v1406_v41, %v1413_v42  ;;  %v2937_v46 = vcombine.high %v1406_v41, %v1413_v42 }
 0x4be   : > { %v1425_v47 = vrot.slane %v1418_v43, %v4669_v28  ;;  %v1433_v48 = vrot.slane %v2936_v44, %v4669_v28  ;;  %v1441_v49 = vrot.slane %v1434_v45, %v4669_v28  ;;  %v1449_v50 = vrot.slane %v2937_v46, %v4669_v28 }
 0x4c0   : > { %v1450_v52 = vcombine.low %v1425_v47, %v1433_v48  ;;  %v1466_v53 = vcombine.low %v1441_v49, %v1449_v50  ;;  %v1451_v58 = vcombine.high %v1425_v47, %v1433_v48  ;;  %v1467_v59 = vcombine.high %v1441_v49, %v1449_v50 }
 0x4c2   : > { %v1458_v56 = vrot.slane %v1450_v52, %v4673_v35  ;;  %v1474_v57 = vrot.slane %v1466_v53, %v4673_v35  ;;  %v1465_v63 = vrot.slane %v1451_v58, %v4673_v35  ;;  %v1481_v0 = vrot.slane %v1467_v59, %v4673_v35  ;;  %v2296_v58 = vld [vmem:[%s4520_s5 + $0x78] sm:$0xff] }
 0x4c4   : > { %v1482_v60 = vcombine.low %v1458_v56, %v1474_v57  ;;  %v1483_v62 = vcombine.high %v1458_v56, %v1474_v57  ;;  %v1484_v2 = vcombine.low %v1465_v63, %v1481_v0  ;;  %v1485_v8 = vcombine.high %v1465_v63, %v1481_v0  ;;  %v2295_v57 = vld [vmem:[%s4520_s5 + $0x70] sm:$0xff] }
 0x4c6   : > { %3213 = vmatpush3.msra.mxu1 %v1482_v60 }
 0x4c7   : > { %3215 = vmatmul.mubr.msk.f32.vlgmr.msra.gmra.mrb[10].mxu1 %vm1791_vm2, %v1829_v61  ;;  %3217 = vmatprep.subr.mxu1 %v4000_v12 }
 0x4c8   : > { %3218 = vmatpush3.msra.mxu1 %v1483_v62  ;;  %3219 = vmatprep.mubr.msk.f32.mxu1 %vm3999_vm0, %v4000_v12  ;;  %v3431_v62 = vpack.c.bf16 %v2296_v58, %v2295_v57 }
 0x4c9   : > { %3222 = vmatprep.subr.mxu1 %v4000_v12 }
 0x4cb   : > { %3220 = vmatmul.mubr.msk.f32.vlgmr.msra.gmra.mrb[12].mxu1 %vm1791_vm2, %v1831_v1 }
 0x4cc   : > { %3223 = vmatpush3.msra.mxu1 %v1484_v2  ;;  %3224 = vmatprep.mubr.msk.f32.mxu1 %vm3999_vm0, %v4000_v12 }
 0x4cd   : > { %3227 = vmatprep.subr.mxu1 %v4000_v12 }
 0x4e0   : > { %v1824_v3 = vpop.xlane.xlu1 %1823 }
 0x4e1   : > { %3635 = vrcp.f32 %v1824_v3 }
 0x4e4   : > { %v1827_v5 = vpop.xlane.xlu0 %1826 }
 0x4e5   : > { %3637 = vrcp.f32 %v1827_v5 }
 0x4eb   : > { %v3636_v6 = vpop.eup %3635 }
 0x4ec   : > { %v1833_v7 = vmul.f32 %v3636_v6, %v4746_v16  ;;  %v2284_v16 = vld [vmem:[%s4520_s5 + $0x18] sm:$0xff] }
 0x4ed   : > { %v3413_v17 = vpack.c.bf16 %v2284_v16, %v2283_v14 }
 0x4ee   : > { %3225 = vmatmul.mubr.msk.f32.vlgmr.msra.gmra.mrb[14].mxu1 %vm1791_vm2, %v1833_v7 }
 0x4ef   : > { %v3638_v9 = vpop.eup %3637  ;;  %3228 = vmatpush3.msra.mxu1 %v1485_v8  ;;  %3229 = vmatprep.mubr.msk.f32.mxu1 %vm3999_vm0, %v4000_v12  ;;  %v2384_v8 = vld [vmem:[%s4522_s27] sm:$0xff] }
 0x4f0   : > { %v1835_v10 = vmul.f32 %v3638_v9, %v4750_v18  ;;  %3433 = vmatprep.subr.bf16.mxu1 %v3998_v4  ;;  %v2285_v18 = vld [vmem:[%s4520_s5 + $0x20] sm:$0xff]  ;;  %3414 = vmatpush3.bf16.msra.mxu0 %v3413_v17  ;;  %v2385_v9 = vld [vmem:[%s4522_s27 + $0x8] sm:$0xff] }
 0x4f1   : > { %v3416_v20 = vpack.c.bf16 %v2286_v19, %v2285_v18  ;;  %3415 = vmatprep.subr.bf16.mxu0 %v3998_v4  ;;  %v3434_v11 = vpack.c.bf16 %v2385_v9, %v2384_v8  ;;  %v2514_v9 = vld [vmem:[%s4556_s1 + $0x50] sm:$0xff] }
 0x4f2   : > { %3230 = vmatmul.mubr.msk.f32.vlgmr.msra.gmra.mrb[16].mxu1 %vm1791_vm2, %v1835_v10  ;;  %v2386_v10 = vld [vmem:[%s4522_s27 + $0x10] sm:$0xff] }
 0x4f3   : > { %3299 = vmatprep.mubr.msk.f32.mxu1 %vm3999_vm0, %v4000_v12  ;;  %3435 = vmatpush3.bf16.msra.mxu1 %v3434_v11  ;;  %v3437_v18 = vpack.c.bf16 %v2387_v13, %v2386_v10  ;;  %v2515_v10 = vld [vmem:[%s4556_s1 + $0x58] sm:$0xff]  ;;  %v2516_v13 = vld [vmem:[%s4556_s1 + $0x60] sm:$0xff] }
 0x4f4   : > { %3417 = vmatpush3.bf16.msra.mxu0 %v3416_v20  ;;  %3436 = vmatprep.subr.bf16.mxu1 %v3998_v4  ;;  %v3473_v11 = vpack.c.bf16 %v2515_v10, %v2514_v9 }
 0x4f5   : > { %3418 = vmatprep.subr.bf16.mxu0 %v3998_v4 }
 0x4f7   : > { %3438 = vmatpush3.bf16.msra.mxu1 %v3437_v18 }
 0x4f8   : > { %3420 = vmatpush3.bf16.msra.mxu0 %v3419_v23  ;;  %v2389_v23 = vld [vmem:[%s4522_s27 + $0x28] sm:$0xff]  ;;  %3439 = vmatprep.subr.bf16.mxu1 %v3998_v4 }
 0x4f9   : > { %3421 = vmatprep.subr.bf16.mxu0 %v3998_v4  ;;  %v3440_v29 = vpack.c.bf16 %v2389_v23, %v2388_v22 }
 0x4fb   : > { %3441 = vmatpush3.bf16.msra.mxu1 %v3440_v29 }
 0x4fc   : > { %3423 = vmatpush3.bf16.msra.mxu0 %v3422_v26  ;;  %3442 = vmatprep.subr.bf16.mxu1 %v3998_v4 }
 0x4fd   : > { %3424 = vmatprep.subr.bf16.mxu0 %v3998_v4 }
 0x500   : > { %3426 = vmatpush3.bf16.msra.mxu0 %v3425_v30  ;;  %v2390_v30 = vld [vmem:[%s4522_s27 + $0x30] sm:$0xff] }
 0x501   : > { %3427 = vmatprep.subr.bf16.mxu0 %v3998_v4 }
 0x504   : > { %3429 = vmatpush3.bf16.msra.mxu0 %v3428_v33  ;;  %v2393_v33 = vld [vmem:[%s4522_s27 + $0x48] sm:$0xff] }
 0x505   : > { %3430 = vmatprep.subr.bf16.mxu0 %v3998_v4 }
 0x508   : > { %3432 = vmatpush3.bf16.msra.mxu0 %v3431_v62 }
 0x509   : > { %3457 = vmatprep.subr.bf16.mxu0 %v3998_v4 }
 0x59a   : > { %v1905_v34 = vpop.f32.mrb[10].mxu1 }
 0x59b   : > { %v3216_v36 = vpop.f32.mrb[11].mxu1 }
 0x59c   : > { %v2394_v36 = vld [vmem:[%s4522_s27 + $0x50] sm:$0xff] }
 0x59e   : > { %v1978_v37 = vpop.f32.mrb[12].mxu1 }
 0x59f   : > { %v3221_v38 = vpop.f32.mrb[13].mxu1 }
 0x5c1   : > { %v2051_v39 = vpop.f32.mrb[14].mxu1 }
 0x5c2   : > { %v2128_v40 = vcombine.low %v1905_v34, %v2051_v39  ;;  %v2129_v41 = vcombine.high %v1905_v34, %v2051_v39  ;;  %v3226_v42 = vpop.f32.mrb[15].mxu1  ;;  %v3446_v34 = vpack.c.bf16 %v2393_v33, %v2392_v32 }
 0x5c4   : > { %v2136_v47 = vrot.slane %v2128_v40, %v4669_v28  ;;  %v2143_v48 = vrot.slane %v2129_v41, %v4669_v28 }
 0x5c5   : > { %v2124_v43 = vpop.f32.mrb[16].mxu1 }
 0x5c6   : > { %v2144_v44 = vcombine.low %v1978_v37, %v2124_v43  ;;  %v2145_v45 = vcombine.high %v1978_v37, %v2124_v43  ;;  %v3231_v46 = vpop.f32.mrb[17].mxu1  ;;  %v2395_v37 = vld [vmem:[%s4522_s27 + $0x58] sm:$0xff] }
 0x5c7   : > { %v3449_v38 = vpack.c.bf16 %v2395_v37, %v2394_v36  ;;  %v2397_v46 = vld [vmem:[%s4522_s27 + $0x68] sm:$0xff] }
 0x5c8   : > { %v2152_v49 = vrot.slane %v2144_v44, %v4669_v28  ;;  %v2159_v50 = vrot.slane %v2145_v45, %v4669_v28  ;;  %v2396_v45 = vld [vmem:[%s4522_s27 + $0x60] sm:$0xff] }
 0x5ca   : > { %v2160_v52 = vcombine.low %v2136_v47, %v2152_v49  ;;  %v2161_v53 = vcombine.high %v2136_v47, %v2152_v49  ;;  %v2176_v55 = vcombine.low %v2143_v48, %v2159_v50  ;;  %v2177_v56 = vcombine.high %v2143_v48, %v2159_v50  ;;  %v2398_v48 = vld [vmem:[%s4522_s27 + $0x70] sm:$0xff]  ;;  %v2399_v49 = vld [vmem:[%s4522_s27 + $0x78] sm:$0xff] }
 0x5cb   : > { %v3452_v47 = vpack.c.bf16 %v2397_v46, %v2396_v45  ;;  %v3455_v50 = vpack.c.bf16 %v2399_v49, %v2398_v48 }
 0x5cc   : > { %v2168_v59 = vrot.slane %v2160_v52, %v4673_v35  ;;  %v2175_v60 = vrot.slane %v2161_v53, %v4673_v35  ;;  %v2184_v54 = vrot.slane %v2176_v55, %v4673_v35  ;;  %v2191_v61 = vrot.slane %v2177_v56, %v4673_v35  ;;  %v2953_v56 = vld [vmem:[%s770_s13] ss:$0 sm:$0xff] }
 0x5ce   : > { %v2196_v63 = vcombine.low %v2168_v59, %v2175_v60  ;;  %v2950_v0 = vcombine.high %v2168_v59, %v2175_v60  ;;  %v2212_v1 = vcombine.low %v2184_v54, %v2191_v61  ;;  %v2951_v2 = vcombine.high %v2184_v54, %v2191_v61  ;;  %v2504_v59 = vld [vmem:[%s4556_s1] sm:$0xff]  ;;  %v2505_v60 = vld [vmem:[%s4556_s1 + $0x8] sm:$0xff]  ;;  %v2507_v61 = vld [vmem:[%s4556_s1 + $0x18] sm:$0xff] }
 0x5cf   : > { %v3458_v54 = vpack.c.bf16 %v2505_v60, %v2504_v59 }
 0x5d0   : > { %v2203_v3 = vrot.slane %v2196_v63, %v4669_v28  ;;  %v2211_v5 = vrot.slane %v2950_v0, %v4669_v28  ;;  %v2219_v6 = vrot.slane %v2212_v1, %v4669_v28  ;;  %v2227_v7 = vrot.slane %v2951_v2, %v4669_v28  ;;  %v2508_v63 = vld [vmem:[%s4556_s1 + $0x20] sm:$0xff]  ;;  %v2509_v0 = vld [vmem:[%s4556_s1 + $0x28] sm:$0xff]  ;;  %v2510_v2 = vld [vmem:[%s4556_s1 + $0x30] sm:$0xff] }
 0x5d1   : > { %v3464_v1 = vpack.c.bf16 %v2509_v0, %v2508_v63 }
 0x5d2   : > { %v2229_v14 = vcombine.high %v2203_v3, %v2211_v5  ;;  %v2245_v15 = vcombine.high %v2219_v6, %v2227_v7  ;;  %v2228_v16 = vcombine.low %v2203_v3, %v2211_v5  ;;  %v2244_v17 = vcombine.low %v2219_v6, %v2227_v7  ;;  %v2511_v3 = vld [vmem:[%s4556_s1 + $0x38] sm:$0xff]  ;;  %v2512_v6 = vld [vmem:[%s4556_s1 + $0x40] sm:$0xff]  ;;  %v2513_v7 = vld [vmem:[%s4556_s1 + $0x48] sm:$0xff] }
 0x5d3   : > { %v3467_v5 = vpack.c.bf16 %v2511_v3, %v2510_v2  ;;  %v3470_v8 = vpack.c.bf16 %v2513_v7, %v2512_v6 }
 0x5d4   : > { %v2243_v19 = vrot.slane %v2229_v14, %v4673_v35  ;;  %v2259_v28 = vrot.slane %v2245_v15, %v4673_v35  ;;  %v2236_v20 = vrot.slane %v2228_v16, %v4673_v35  ;;  %v2252_v21 = vrot.slane %v2244_v17, %v4673_v35  ;;  %v2391_v35 = vld [vmem:[%s4522_s27 + $0x38] sm:$0xff]  ;;  %v2517_v14 = vld [vmem:[%s4556_s1 + $0x68] sm:$0xff]  ;;  %v2518_v16 = vld [vmem:[%s4556_s1 + $0x70] sm:$0xff] }
 0x5d5   : > { %v3443_v31 = vpack.c.bf16 %v2391_v35, %v2390_v30  ;;  %v3476_v15 = vpack.c.bf16 %v2517_v14, %v2516_v13  ;;  %v2519_v17 = vld [vmem:[%s4556_s1 + $0x78] sm:$0xff] }
 0x5d6   : > { %v2262_v24 = vcombine.low %v2243_v19, %v2259_v28  ;;  %v2261_v25 = vcombine.high %v2236_v20, %v2252_v21  ;;  %v2263_v26 = vcombine.high %v2243_v19, %v2259_v28  ;;  %v2260_v27 = vcombine.low %v2236_v20, %v2252_v21  ;;  %v2954_v19 = vld [vmem:[%s773_s12] ss:$0 sm:$0xff] }
 0x5d7   : > { %3444 = vmatpush3.bf16.msra.mxu1 %v3443_v31  ;;  %v3479_v18 = vpack.c.bf16 %v2519_v17, %v2518_v16 }
 0x5d8   : > { %2269 = vrot.lane.b32.xlu1 %v2262_v24, %s4003_s9  ;;  %2265 = vrot.lane.b32.xlu0 %v2261_v25, %s4001_s0 }
 0x5d9   : > { %3445 = vmatprep.subr.bf16.mxu1 %v3998_v4 }
 0x5db   : > { %3447 = vmatpush3.bf16.msra.mxu1 %v3446_v34 }
 0x5dc   : > { %2273 = vrot.lane.b32.xlu1 %v2263_v26, %s4002_s2  ;;  %3448 = vmatprep.subr.bf16.mxu1 %v3998_v4 }
 0x5df   : > { %3450 = vmatpush3.bf16.msra.mxu1 %v3449_v38 }
 0x5e0   : > { %3451 = vmatprep.subr.bf16.mxu1 %v3998_v4 }
 0x5e3   : > { %3453 = vmatpush3.bf16.msra.mxu1 %v3452_v47  ;;  %v2955_v47 = vld [vmem:[%s776_s4] ss:$0 sm:$0xff] }
 0x5e4   : > { %3454 = vmatprep.subr.bf16.mxu1 %v3998_v4 }
 0x5e7   : > { %3456 = vmatpush3.bf16.msra.mxu1 %v3455_v50 }
 0x64a   : > { %v2270_v39 = vpop.permute.xlu1 %2269  ;;  %v2266_v40 = vpop.permute.xlu0 %2265 }
 0x64b   : > { %v2276_v41 = vsel %vm1486_vm1, %v2260_v27, %v2266_v40 }
 0x64c   : > { %v2278_v43 = vsel %vm2277_vm3, %v2276_v41, %v2270_v39 }
 0x64e   : > { %v2274_v42 = vpop.permute.xlu1 %2273 }
 0x64f   : > { %v2280_v44 = vsel %vm2279_vm4, %v2278_v43, %v2274_v42 }
 0x650   : > { %3265 = vmatmul.mubr.f32.vlgmr.msra.gmra.mrb[4].mxu0 %v2280_v44 }
 0x651   : > { %3334 = vmatprep.mubr.msk.f32.mxu0 %vm3999_vm0, %v4000_v12  ;;  %v2952_v12 = vld [vmem:[%s5102_s25] ss:$0 sm:$0xff]  ;;  %3459 = vmatpush3.bf16.msra.mxu0 %v3458_v54 }
 0x652   : > { %3460 = vmatprep.subr.bf16.mxu0 %v3998_v4 }
 0x723   : > { %v2363_v52 = vpop.f32.mrb[4].mxu0 }
 0x724   : > { %v2367_v53 = vadd.f32 %v2363_v52, %v4616_v51  ;;  %v3266_v55 = vpop.f32.mrb[5].mxu0  ;;  %v2506_v51 = vld [vmem:[%s4556_s1 + $0x10] sm:$0xff]  ;;  %v2956_v52 = vld [vmem:[%s779_s29] ss:$0 sm:$0xff] }
 0x725   : > { %v3461_v62 = vpack.c.bf16 %v2507_v61, %v2506_v51 }
 0x726   : > { %v2375_v57 = vmul.f32 %v2952_v12, %v2367_v53  ;;  %v2957_v53 = vld [vmem:[%s782_s11] ss:$0 sm:$0xff] }
 0x727   : > { %3462 = vmatpush3.bf16.msra.mxu0 %v3461_v62 }
 0x728   : > { %v4871_v58 = vadd.f32 %v2953_v56, %v2375_v57  ;;  %3463 = vmatprep.subr.bf16.mxu0 %v3998_v4 }
 0x72a   : > { %3300 = vmatmul.mubr.f32.vlgmr.msra.gmra.mrb[18].mxu1 %v4871_v58 }
 0x72b   : > { %3465 = vmatpush3.bf16.msra.mxu0 %v3464_v1 }
 0x72c   : > { %3466 = vmatprep.subr.bf16.mxu0 %v3998_v4 }
 0x72f   : > { %3468 = vmatpush3.bf16.msra.mxu0 %v3467_v5 }
 0x730   : > { %3469 = vmatprep.subr.bf16.mxu0 %v3998_v4 }
 0x733   : > { %3471 = vmatpush3.bf16.msra.mxu0 %v3470_v8 }
 0x734   : > { %3472 = vmatprep.subr.bf16.mxu0 %v3998_v4 }
 0x737   : > { %3474 = vmatpush3.bf16.msra.mxu0 %v3473_v11 }
 0x738   : > { %3475 = vmatprep.subr.bf16.mxu0 %v3998_v4 }
 0x73b   : > { %3477 = vmatpush3.bf16.msra.mxu0 %v3476_v15 }
 0x73c   : > { %3478 = vmatprep.subr.bf16.mxu0 %v3998_v4 }
 0x73f   : > { %3480 = vmatpush3.bf16.msra.mxu0 %v3479_v18 }
 0x7fd   : > { %v2473_v28 = vpop.f32.mrb[18].mxu1 }
 0x7fe   : > { %v2474_v20 = vadd.f32 %v2954_v19, %v2473_v28  ;;  %v3301_v21 = vpop.f32.mrb[19].mxu1 }
 0x800   : > { %v2478_v22 = vmul.f32 0.70710677, %v2474_v20  ;;  %v2477_v44 = vmul.f32 0.5, %v2474_v20 }
 0x802   : > { %v2479_v23 = vand.u32 2147483647, %v2478_v22  ;;  %vm2499_vm5 = vcmp.lt.f32.partialorder %v2478_v22, 0.0 }
 0x804   : > { %v2480_v24 = vmul.f32 0.3275911, %v2479_v23  ;;  %v2493_v26 = vmul.f32 %v2479_v23, %v2479_v23 }
 0x806   : > { %v2481_v25 = vadd.f32 1.0, %v2480_v24  ;;  %v2494_v4 = vsub.f32 0.0, %v2493_v26 }
 0x808   : > { %3639 = vrcp.f32 %v2481_v25  ;;  %v2495_v35 = vmul.f32 1.442695, %v2494_v4 }
 0x80a   : > { %3641 = vpow2.f32 %v2495_v35 }
 0x812   : > { %v3640_v27 = vpop.eup %3639 }
 0x813   : > { %v2484_v29 = vmul.f32 1.0614054, %v3640_v27 }
 0x814   : > { %v3642_v39 = vpop.eup %3641 }
 0x815   : > { %v2485_v30 = vadd.f32 -1.4531521, %v2484_v29 }
 0x817   : > { %v2486_v31 = vmul.f32 %v3640_v27, %v2485_v30 }
 0x819   : > { %v2487_v32 = vadd.f32 1.4214138, %v2486_v31 }
 0x81b   : > { %v2488_v33 = vmul.f32 %v3640_v27, %v2487_v32 }
 0x81d   : > { %v2489_v34 = vadd.f32 -0.28449672, %v2488_v33 }
 0x81f   : > { %v2490_v36 = vmul.f32 %v3640_v27, %v2489_v34 }
 0x821   : > { %v2491_v37 = vadd.f32 0.2548296, %v2490_v36 }
 0x823   : > { %v2492_v38 = vmul.f32 %v3640_v27, %v2491_v37 }
 0x825   : > { %v2497_v40 = vmul.f32 %v3642_v39, %v2492_v38 }
 0x827   : > { %v2498_v41 = vsub.f32 1.0, %v2497_v40 }
 0x829   : > { %v2500_v42 = vsub.f32 0.0, %v2498_v41 }
 0x82b   : > { %v2501_v43 = vsel %vm2499_vm5, %v2500_v42, %v2498_v41 }
 0x82c   : > { %v2502_v45 = vadd.f32 1.0, %v2501_v43 }
 0x82e   : > { %v2503_v46 = vmul.f32 %v2502_v45, %v2477_v44 }
 0x830   : > { %3335 = vmatmul.mubr.f32.vlgmr.msra.gmra.mrb[6].mxu0 %v2503_v46 }
 0x903   : > { %v2593_v48 = vpop.f32.mrb[6].mxu0 }
 0x904   : > { %v2594_v49 = vadd.f32 %v2955_v47, %v2593_v48  ;;  %v3336_v50 = vpop.f32.mrb[7].mxu0 }
 0x906   : > { %v2597_v12 = vadd.f32 %v2594_v49, %v4871_v58  ;;  %2618 = sbr.rel (%p2958_p1) target bundleno = 2317 (0x90d), region = 108 }
 0x908   : > { %v2605_v55 = vmul.f32 %v2956_v52, %v2597_v12 }
 0x90a   : > { %v2613_v56 = vadd.f32 %v2957_v53, %v2605_v55 }
 0x90c   : > { %2614 = vst [vmem:[#allocation2] sm:$0xff] %v2613_v56  ;;  %2619 = vst [vmem:[%s4560_s19] sm:$0xff] (!%p2958_p1), %v2613_v56 }
 0x90d PF: > { %s5109_s4 = sld [smem:[#allocation27_spill]]  ;;  %s5110_s29 = sld [smem:[#allocation37_spill]] }
 0x90e   : > { %s5111_s2 = sld [smem:[#allocation52_spill]]  ;;  %s2634_s23 = sshll.u32 %s4560_s19, 4  ;;  %s2635_s23 = int_to_ptr.vmem [resolvable:$true] %s2634_s23 }
 0x90f   : > { %s2621_s11 = scalar_lea.sflag [#allocation5], %s4492_s16  ;;  %s3853_s26 = scalar_lea.vmem %s2635_s23, 128 }
 0x910   : > { %p3854_p0 = scmp.ne.s32.totalorder %s2635_s23, %s3853_s26  ;;  %s4006_s18 = smov [#allocation15]  }
 0x911   : > { %s3857_s6 = sshll.u32 %s4006_s18, 4  ;;  %s3858_s6 = int_to_ptr.vmem [resolvable:$false] %s3857_s6 }
 0x912   : > { %s3859_s25 = scalar_lea.vmem %s3858_s6, 256  ;;  %p3860_p8 = scmp.lt.s32.totalorder %s2635_s23, %s3858_s6 }
 0x913   : > { %s2960_s17 = sshll.u32 %s5109_s4, 7  ;;  %p5112_p13 = scmp.ne.s32.totalorder %s5110_s29, 0 }
 0x914   : > { %s4924_s9 = scalar_lea.hbm %s5111_s2, %s2960_s17  ;;  %p3861_p9 = scmp.lt.s32.totalorder %s3859_s25, %s3853_s26 }
 0x915   : > { %p3855_p11 = pnand %p3854_p0, %p5112_p13 }
 0x916   : > { %p3862_p2 = por %p3861_p9, %p3860_p8 }
 0x917   : > { %p3856_p12 = pneg %p3855_p11 }
 0x919   : > { %p3863_p5 = pnand %p3862_p2, %p3856_p12 }
 0x91b   : > { %3866 = shalt.err (!%p3863_p5)
}
 0x91c   : > { %s3867_s16 = scalar_lea.hbm %s4924_s9, 128  ;;  %s3871_s28 = scalar_lea.hbm %s5111_s2, 256 }
 0x91d   : > { %p3868_p7 = scmp.ne.s32.totalorder %s4924_s9, %s3867_s16  ;;  %p3872_p4 = scmp.lt.u32.totalorder %s4924_s9, %s5111_s2 }
 0x91e   : > { %p3873_p3 = scmp.lt.u32.totalorder %s3871_s28, %s3867_s16  ;;  %p3875_p0 = scmp.lt.u32.totalorder %s3867_s16, %s4924_s9 }
 0x91f   : > { %p3869_p10 = pnand %p3868_p7, %p5112_p13 }
 0x920   : > { %p3874_p1 = por %p3873_p3, %p3872_p4 }
 0x921   : > { %p3870_p6 = pneg %p3869_p10 }
 0x922   : > { %p3876_p11 = por %p3875_p0, %p3874_p1 }
 0x924   : > { %p3877_p12 = pnand %p3876_p11, %p3870_p6 }
 0x926   : > { %3880 = shalt.err (!%p3877_p12)
}
 0x927   : > { %3495 = dma.vmem_to_hbm [thread:$0]  (%p5112_p13), %s2635_s23, 128, %s4924_s9, %s2621_s11  }
 0x928 PF: > { %s5113_s10 = sld [smem:[#allocation30_spill]]  ;;  %s5114_s5 = sld [smem:[#allocation23_spill]] }
 0x929   : > { %s5115_s27 = sld [smem:[#allocation38_spill]] }
 0x92e   : > { %p3524_p8 = scmp.ge.s32.totalorder %s5113_s10, 2  ;;  %s2646_s22 = sand.u32 1, %s5114_s5  }
 0x92f   : > { %p5116_p9 = scmp.ne.s32.totalorder %s5115_s27, 0  ;;  %s2647_s1 = scalar_lea.sflag [#allocation5], %s2646_s22 }
 0x931   : > { %p3520_p2 = pnand %p3524_p8, %p5116_p9 }
 0x933   : > { %3942 = dma.done.wait (!%p3520_p2), %s2647_s1, 128  }
 0x934   : > { %3944 = vsyncadd (!%p3520_p2), %s2647_s1, 4294967168  ;;  %s38_s18 = sadd.s32 1, %s5113_s10   ;;  %s5117_s25 = sld [smem:[#allocation21_spill]] }
 0x935   : > { %p35_p5 = scmp.ge.s32.totalorder %s38_s18, 6   ;;  %s5118_s26 = sld [smem:[#allocation22_spill]] }
 0x936   : > { %s5119_s27 = sld [smem:[#allocation34_spill]]  ;;  %s5120_s28 = sld [smem:[#allocation24_spill]] }
 0x937   : > { %s5121_s29 = sld [smem:[#allocation25_spill]]  ;;  %s5122_s30 = sld [smem:[#allocation36_spill]] }
 0x938   : > { %s5123_s14 = sld [smem:[#allocation28_spill]]  ;;  %s5124_s15 = sld [smem:[#allocation29_spill]] }
 0x939   : > { %s5125_s16 = sld [smem:[#allocation32_spill]]  ;;  %s5126_s17 = sld [smem:[#allocation33_spill]] }
 0x93a   :  { %37 = sbr.rel (!%p35_p5) target bundleno = 30 (0x1e), region = 215 }
 0x941   :  { %2652 = vsyncpa [#allocation4], 1 }
 0x942   :  { %2654 = vsyncpa [#allocation4 + $0x1], 1 }
 0x943   :  { %2655 = vsyncpa [#allocation7], 1 }
 0x944   :  { %2657 = vsyncpa [#allocation7 + $0x1], 1 }
 0x945   :  { %2658 = vsyncpa [#allocation10], 1 }
 0x946   :  { %2660 = vsyncpa [#allocation10 + $0x1], 1 }
 0x947   :  { %2661 = vsyncpa [#allocation13], 1 }
 0x948   :  { %2663 = vsyncpa [#allocation13 + $0x1], 1 }
 0x949   :  { %2664 = vsyncpa [#allocation5], 1 }
 0x94a   :  { %2666 = vsyncpa [#allocation5 + $0x1], 1 }

</bundles_post_ra>
